<compile_context>
chip_gen: v7x
topology: tpu7x:2x2x1
jax: 0.10.0
libtpu: 0.0.40
codegen_flags: <defaults>
</compile_context>

<pallas_src>
import jax
import jax.numpy as jnp
from jax.experimental import pallas as pl
from jax.experimental.pallas import tpu as pltpu

# ----------------------------------------------------------------------------
# Synthetic constants standing in for the game-specific globals of the repo.
# ----------------------------------------------------------------------------
NUMBER_OF_UNIQUE_CARDS = 8
CARD_SPECIFIC_FEATURES = 6       # NUMBER_FEATURES_PER_GROUP[GenericCardSpecificFeatures]
CARDS_CONTEXT_FEATURES = 4       # NUMBER_FEATURES_PER_GROUP[GenericCardsContextFeatures]
OBJECTIVE_CONTEXT_FEATURES = 3   # NUMBER_FEATURES_PER_GROUP[GenericObjectiveContextFeatures]

DTYPE = jnp.float32
LANE = 128                       # lane padding for every layer dim (all dims <= 128 here)
SUB = 8                          # sublane count / padded "card rows" per hand


def _card_id_from_str(card_str):
    # Stand-in for Card.from_representation(card_str).id, e.g. "C3" -> 3.
    return int(card_str[1:])


# ----------------------------------------------------------------------------
# Parameter construction (deterministic, mimics torch.nn.Linear default init).
# Weights stored as (in_features, out_features) == torch W.T, so y = x @ W + b.
# ----------------------------------------------------------------------------
def _create_ann_params(key, input_size, hidden_layers_size, output_size):
    if hidden_layers_size:
        layer_sizes = [input_size, *hidden_layers_size, output_size]
    else:
        layer_sizes = [input_size, output_size]
    weights, biases = [], []
    for l in range(len(layer_sizes) - 1):
        fan_in, fan_out = layer_sizes[l], layer_sizes[l + 1]
        key, kw, kb = jax.random.split(key, 3)
        bound = 1.0 / (fan_in ** 0.5)
        weights.append(jax.random.uniform(kw, (fan_in, fan_out), DTYPE, -bound, bound))
        biases.append(jax.random.uniform(kb, (fan_out,), DTYPE, -bound, bound))
    return {"w": weights, "b": biases}


def init_ann_pipeline_params(key, card_spec, hand_spec, strategy_spec, q_spec):
    k1, k2, k3, k4 = jax.random.split(key, 4)
    card_out = card_spec["output_size"]
    hand_out = hand_spec["output_size"]
    strat_out = strategy_spec["output_size"]
    return {
        "card": _create_ann_params(
            k1, CARD_SPECIFIC_FEATURES, card_spec["hidden_layers_size"], card_out),
        "hand": _create_ann_params(
            k2, card_out * NUMBER_OF_UNIQUE_CARDS + CARDS_CONTEXT_FEATURES,
            hand_spec["hidden_layers_size"], hand_out),
        "strategy": _create_ann_params(
            k3, hand_out + OBJECTIVE_CONTEXT_FEATURES,
            strategy_spec["hidden_layers_size"], strat_out),
        "q": _create_ann_params(
            k4, card_out + strat_out, q_spec["hidden_layers_size"], 1),
        "card_output_size": card_out,
    }


# ----------------------------------------------------------------------------
# One-time packing of all parameters into a SINGLE (rows, 128) f32 slab.
# Layer-0 of hand / strategy / q is split so the torch "concat" inputs become
# sums of independent matmuls inside the kernel.  Biases are pre-broadcast to
# 8 sublanes.  Returns (slab, offsets, meta).
# ----------------------------------------------------------------------------
def _pad_w128(w):
    assert w.shape[0] <= LANE and w.shape[1] <= LANE, w.shape
    return jnp.zeros((LANE, LANE), DTYPE).at[:w.shape[0], :w.shape[1]].set(w.astype(DTYPE))


def _pad_b8(b):
    assert b.shape[0] <= LANE, b.shape
    row = jnp.zeros((1, LANE), DTYPE).at[0, :b.shape[0]].set(b.astype(DTYPE))
    return jnp.tile(row, (SUB, 1))          # (8, 128): bias pre-broadcast to sublanes


def pad_pipeline_params(params):
    card_out = params["card_output_size"]
    U = NUMBER_OF_UNIQUE_CARDS
    regions, offs = [], {}
    cursor = 0

    def add(name, arr):
        nonlocal cursor
        offs[name] = (cursor, int(arr.shape[0]))
        regions.append(arr)
        cursor += int(arr.shape[0])

    # --- card ANN: plain padded chain ----------------------------------------
    cw, cb = params["card"]["w"], params["card"]["b"]
    for l, (w, b) in enumerate(zip(cw, cb)):
        add(f"card_w{l}", _pad_w128(w))
        add(f"card_b{l}", _pad_b8(b))

    # --- hand ANN: layer 0 split into per-card-id OHE blocks + context part --
    hw, hb = params["hand"]["w"], params["hand"]["b"]
    w0 = hw[0]
    h1 = w0.shape[1]
    assert h1 <= LANE and card_out <= LANE
    blocks = jnp.zeros((U * LANE, LANE), DTYPE)
    for u in range(U):
        blocks = blocks.at[u * LANE:u * LANE + card_out, :h1].set(
            w0[u * card_out:(u + 1) * card_out, :].astype(DTYPE))
    add("hand_wblocks", blocks)                                   # (U*128, 128)
    wctx = jnp.zeros((LANE, LANE), DTYPE).at[:CARDS_CONTEXT_FEATURES, :h1].set(
        w0[card_out * U:, :].astype(DTYPE))
    add("hand_wctx", wctx)
    add("hand_b0", _pad_b8(hb[0]))
    for l in range(1, len(hw)):
        add(f"hand_w{l}", _pad_w128(hw[l]))
        add(f"hand_b{l}", _pad_b8(hb[l]))

    # --- strategy ANN: layer 0 split into hand-repr part + context part ------
    sw, sb = params["strategy"]["w"], params["strategy"]["b"]
    w0 = sw[0]
    hand_out = w0.shape[0] - OBJECTIVE_CONTEXT_FEATURES
    s1 = w0.shape[1]
    assert hand_out <= LANE and s1 <= LANE
    add("strat_wh", jnp.zeros((LANE, LANE), DTYPE).at[:hand_out, :s1].set(
        w0[:hand_out, :].astype(DTYPE)))
    add("strat_wc", jnp.zeros((LANE, LANE), DTYPE).at[:OBJECTIVE_CONTEXT_FEATURES, :s1].set(
        w0[hand_out:, :].astype(DTYPE)))
    add("strat_b0", _pad_b8(sb[0]))
    for l in range(1, len(sw)):
        add(f"strat_w{l}", _pad_w128(sw[l]))
        add(f"strat_b{l}", _pad_b8(sb[l]))

    # --- q ANN: layer 0 split into strategy-repr part + card-repr part -------
    qw, qb = params["q"]["w"], params["q"]["b"]
    w0 = qw[0]
    strat_out = w0.shape[0] - card_out
    q1 = w0.shape[1]
    assert strat_out <= LANE and q1 <= LANE
    add("q_ws", jnp.zeros((LANE, LANE), DTYPE).at[:strat_out, :q1].set(
        w0[:strat_out, :].astype(DTYPE)))
    add("q_wc", jnp.zeros((LANE, LANE), DTYPE).at[:card_out, :q1].set(
        w0[strat_out:, :].astype(DTYPE)))
    add("q_b0", _pad_b8(qb[0]))
    for l in range(1, len(qw)):
        add(f"q_w{l}", _pad_w128(qw[l]))
        add(f"q_b{l}", _pad_b8(qb[l]))

    slab = jnp.concatenate(regions, axis=0)                       # one contiguous slab
    meta = {"n_card_layers": len(cw), "n_hand_layers": len(hw),
            "n_strat_layers": len(sw), "n_q_layers": len(qw)}
    return slab, offs, meta


# ----------------------------------------------------------------------------
# The fused kernel: card MLP -> single-matmul OHE placement -> hand MLP ->
# strategy MLP -> q MLP.  One grid step per hand; all weights come from the
# single slab operand (static slices).
# ----------------------------------------------------------------------------
def _make_fused_kernel(offs, meta):
    U = NUMBER_OF_UNIQUE_CARDS
    ncl = meta["n_card_layers"]
    nhl = meta["n_hand_layers"]
    nsl = meta["n_strat_layers"]
    nql = meta["n_q_layers"]

    def kernel(cardx_ref, sel_ref, handctx_ref, stratctx_ref, slab_ref, out_ref):
        def ld(name):                              # static slab slice -> VMEM load
            off, rows = offs[name]
            return slab_ref[off:off + rows, :]

        def mm(a, b):
            return jnp.dot(a, b, preferred_element_type=jnp.float32)

        def relu(v):
            return jnp.maximum(v, 0.0)

        # ---- card ANN on all (padded) card rows at once: (8,128) activations --
        h = cardx_ref[...]
        for l in range(ncl):
            h = mm(h, ld(f"card_w{l}")) + ld(f"card_b{l}")
            if l < ncl - 1:
                h = relu(h)
        card_repr = h                                # (8, 128); row i = card i

        # ---- hand ANN layer 0: OHE placement as ONE K = U*128 MXU matmul ------
        # sel[i, id(i)*128 + d] == 1 for live cards, 0 elsewhere (also masks
        # padded rows i >= n).  NOTE: duplicate card ids would sum instead of
        # overwrite; card ids are unique per hand (dict keyed by card).
        card_tiled = jnp.concatenate([card_repr] * U, axis=1)      # (8, U*128)
        ohe = sel_ref[...] * card_tiled                            # (8, U*128)
        per_card = mm(ohe, ld("hand_wblocks"))                     # (8, h1)  single matmul
        ohe_term = jnp.sum(per_card, axis=0, keepdims=True)        # (1, h1)  XLU reduce
        acc = ohe_term + mm(handctx_ref[...], ld("hand_wctx")) + ld("hand_b0")
        h = relu(acc) if nhl > 1 else acc
        for l in range(1, nhl):
            h = mm(h, ld(f"hand_w{l}")) + ld(f"hand_b{l}")
            if l < nhl - 1:
                h = relu(h)
        hand_repr = h                                # (8, 128); only row 0 is meaningful

        # ---- strategy ANN layer 0: hand repr ++ objective context -------------
        acc = (mm(hand_repr, ld("strat_wh"))
               + mm(stratctx_ref[...], ld("strat_wc")) + ld("strat_b0"))
        h = relu(acc) if nsl > 1 else acc
        for l in range(1, nsl):
            h = mm(h, ld(f"strat_w{l}")) + ld(f"strat_b{l}")
            if l < nsl - 1:
                h = relu(h)
        strat_repr = h                               # (8, 128); only row 0 is meaningful

        # ---- q ANN layer 0: strategy repr (broadcast) ++ per-card repr --------
        sb = jnp.broadcast_to(strat_repr[0:1, :], strat_repr.shape)
        acc = mm(card_repr, ld("q_wc")) + mm(sb, ld("q_ws")) + ld("q_b0")
        h = relu(acc) if nql > 1 else acc
        for l in range(1, nql):
            h = mm(h, ld(f"q_w{l}")) + ld(f"q_b{l}")
            if l < nql - 1:
                h = relu(h)

        out_ref[...] = h.astype(out_ref.dtype)       # row i, lane 0 = q(card i)

    return kernel


# ----------------------------------------------------------------------------
# Pipeline factory: packs params once, returns (forward, forward_batch).
# forward() mirrors ANNPipeline.forward for a single hand (batch of one).
# ----------------------------------------------------------------------------
def make_ann_pipeline(params):
    slab, offs, meta = pad_pipeline_params(params)
    U = NUMBER_OF_UNIQUE_CARDS
    slab_rows = int(slab.shape[0])
    kernel = _make_fused_kernel(offs, meta)

    @jax.jit
    def _device_forward(slab_arr, ids, ns, feats, hand_feats, strat_feats):
        # ids (B,U) i32; ns (B,) i32; feats (B,U,F); hand (B,Ch); strat (B,Cs)
        B, _, F = feats.shape
        cardx = jnp.zeros((B, U, LANE), DTYPE).at[:, :, :F].set(feats.astype(DTYPE))
        handctx = jnp.zeros((B, U, LANE), DTYPE).at[:, 0, :hand_feats.shape[-1]].set(
            hand_feats.astype(DTYPE))
        stratctx = jnp.zeros((B, U, LANE), DTYPE).at[:, 0, :strat_feats.shape[-1]].set(
            strat_feats.astype(DTYPE))

        # one-hot lane-block selection mask: sel[b, i, u*128 + d] = 1 iff
        # card row i is live (i < n[b]) and has id u.
        blk = jnp.arange(U * LANE, dtype=jnp.int32) // LANE                  # (U*128,)
        valid = jnp.arange(U, dtype=jnp.int32)[None, :] < ns[:, None]        # (B, U)
        sel = ((ids[:, :, None] == blk[None, None, :])
               & valid[:, :, None]).astype(DTYPE)                            # (B, U, U*128)

        q_pad = pl.pallas_call(
            kernel,
            out_shape=jax.ShapeDtypeStruct((B, U, LANE), DTYPE),
            grid=(B,),
            in_specs=[
                pl.BlockSpec((None, U, LANE), lambda b: (b, 0, 0)),          # card features
                pl.BlockSpec((None, U, U * LANE), lambda b: (b, 0, 0)),      # OHE lane mask
                pl.BlockSpec((None, U, LANE), lambda b: (b, 0, 0)),          # hand context
                pl.BlockSpec((None, U, LANE), lambda b: (b, 0, 0)),          # strategy context
                pl.BlockSpec((slab_rows, LANE), lambda b: (0, 0)),           # weight slab (1 DMA)
            ],
            out_specs=pl.BlockSpec((None, U, LANE), lambda b: (b, 0, 0)),
            compiler_params=pltpu.CompilerParams(
                dimension_semantics=("parallel",)),                          # hands across TCs (v7x)
        )(cardx, sel, handctx, stratctx, slab_arr)

        q_vals = q_pad[:, :, 0]                                              # (B, U)
        playable = feats[:, :, -1] == jnp.asarray(1.0, feats.dtype)          # (B, U)
        return q_vals, playable

    def _prepare_hand(cards_features):
        card_strs = list(cards_features.keys())
        n = len(card_strs)
        assert 0 < n <= U
        ids = jnp.zeros((U,), jnp.int32).at[:n].set(
            jnp.asarray([_card_id_from_str(c) for c in card_strs], jnp.int32))
        feats = jnp.zeros((U, CARD_SPECIFIC_FEATURES), DTYPE).at[:n, :].set(
            jnp.stack([cards_features[c] for c in card_strs]).astype(DTYPE))
        return card_strs, n, ids, feats

    def forward_batch(hands):
        """hands: list of (cards_features, hand_features, strategy_features)."""
        prepped = [_prepare_hand(cf) for cf, _, _ in hands]
        ids = jnp.stack([p[2] for p in prepped])
        ns = jnp.asarray([p[1] for p in prepped], jnp.int32)
        feats = jnp.stack([p[3] for p in prepped])
        handf = jnp.stack([jnp.asarray(hf, DTYPE) for _, hf, _ in hands])
        stratf = jnp.stack([jnp.asarray(sf, DTYPE) for _, _, sf in hands])
        q, playable = _device_forward(slab, ids, ns, feats, handf, stratf)
        q_np, p_np = jax.device_get((q, playable))   # single host sync per batch
        out = []
        for b, (card_strs, n, _, _) in enumerate(prepped):
            out.append({c: jnp.asarray(q_np[b, i:i + 1])
                        for i, c in enumerate(card_strs) if bool(p_np[b, i])})
        return out

    def forward(cards_features, hand_features, strategy_features):
        return forward_batch([(cards_features, hand_features, strategy_features)])[0]

    return forward, forward_batch


# ----------------------------------------------------------------------------
# Pure-JAX reference (mirrors the torch module exactly) for correctness checks.
# ----------------------------------------------------------------------------
def _mlp_ref(x, weights, biases):
    h = x.astype(DTYPE)
    for l, (w, b) in enumerate(zip(weights, biases)):
        h = h @ w + b
        if l < len(weights) - 1:
            h = jnp.maximum(h, 0.0)
    return h


def ann_pipeline_ref(params, cards_features, hand_features, strategy_features):
    card_out = params["card_output_size"]
    card_strs = list(cards_features.keys())
    reprs = {
        c: _mlp_ref(cards_features[c][None, :], params["card"]["w"], params["card"]["b"])[0]
        for c in card_strs}
    ohe = jnp.zeros((card_out * NUMBER_OF_UNIQUE_CARDS,), DTYPE)
    for c in card_strs:
        cid = _card_id_from_str(c)
        ohe = ohe.at[cid * card_out:(cid + 1) * card_out].set(reprs[c])
    hand_in = jnp.concatenate([ohe, hand_features.astype(DTYPE)])[None, :]
    hand_repr = _mlp_ref(hand_in, params["hand"]["w"], params["hand"]["b"])[0]
    strat_in = jnp.concatenate([hand_repr, strategy_features.astype(DTYPE)])[None, :]
    strat_repr = _mlp_ref(strat_in, params["strategy"]["w"], params["strategy"]["b"])[0]
    q = {}
    for c in card_strs:
        if float(jax.device_get(cards_features[c][-1])) == 1.0:
            qin = jnp.concatenate([strat_repr, reprs[c]])[None, :]
            q[c] = _mlp_ref(qin, params["q"]["w"], params["q"]["b"])[0]
    return q


# ----------------------------------------------------------------------------
if __name__ == "__main__":
    key = jax.random.PRNGKey(0)

    card_spec = {"hidden_layers_size": [16], "output_size": 8}
    hand_spec = {"hidden_layers_size": [32], "output_size": 16}
    strategy_spec = {"hidden_layers_size": [32], "output_size": 16}
    q_spec = {"hidden_layers_size": [16], "output_size": None}  # module forces output 1

    key, pkey = jax.random.split(key)
    params = init_ann_pipeline_params(pkey, card_spec, hand_spec, strategy_spec, q_spec)

    def make_hand(key, ids_playable):
        cards = {}
        for cid, playable in ids_playable:
            key, k = jax.random.split(key)
            f = jax.random.normal(k, (CARD_SPECIFIC_FEATURES,), DTYPE)
            f = f.at[-1].set(playable)                 # last feature is "playable" flag
            cards[f"C{cid}"] = f
        key, kh, ks = jax.random.split(key, 3)
        hand = jax.random.normal(kh, (CARDS_CONTEXT_FEATURES,), DTYPE)
        strat = jax.random.normal(ks, (OBJECTIVE_CONTEXT_FEATURES,), DTYPE)
        return key, cards, hand, strat

    key, cards_a, hand_a, strat_a = make_hand(
        key, [(0, 1.0), (2, 0.0), (3, 1.0), (5, 1.0), (7, 0.0)])
    key, cards_b, hand_b, strat_b = make_hand(
        key, [(1, 1.0), (4, 1.0), (6, 0.0)])

    forward, forward_batch = make_ann_pipeline(params)

    # ---- single-hand path (batch of one, same fixed-shape kernel) -----------
    q_a = forward(cards_a, hand_a, strat_a)
    jax.block_until_ready(list(q_a.values()))
    ref_a = ann_pipeline_ref(params, cards_a, hand_a, strat_a)
    assert set(q_a) == {"C0", "C3", "C5"}, sorted(q_a)
    assert set(ref_a) == {"C0", "C3", "C5"}, sorted(ref_a)
    for c in q_a:
        assert jnp.allclose(q_a[c], ref_a[c], atol=1e-4, rtol=1e-4), (c, q_a[c], ref_a[c])

    # ---- batched path: two hands with DIFFERENT sizes share one kernel ------
    q_batch = forward_batch([(cards_a, hand_a, strat_a), (cards_b, hand_b, strat_b)])
    ref_b = ann_pipeline_ref(params, cards_b, hand_b, strat_b)
    for got, ref in zip(q_batch, (ref_a, ref_b)):
        assert set(got) == set(ref), (sorted(got), sorted(ref))
        for c in got:
            assert jnp.allclose(got[c], ref[c], atol=1e-4, rtol=1e-4), (c, got[c], ref[c])

    print("KERNEL_OK")
</pallas_src>

<mosaic_0001>
module attributes {stable_mosaic.version = 11 : i64} {
  func.func @kernel(%arg0: i32, %arg1: memref<1x8x128xf32, #tpu.memory_space<vmem>>, %arg2: memref<1x8x1024xf32, #tpu.memory_space<vmem>>, %arg3: memref<1x8x128xf32, #tpu.memory_space<vmem>>, %arg4: memref<1x8x128xf32, #tpu.memory_space<vmem>>, %arg5: memref<2368x128xf32, #tpu.memory_space<vmem>>, %arg6: memref<1x8x128xf32, #tpu.memory_space<vmem>>) attributes {dimension_semantics = [#tpu.dimension_semantics<parallel>], iteration_bounds = array<i64: 1>, scalar_prefetch = 0 : i64, scratch_operands = 0 : i64, tpu.core_type = #tpu.core_type<tc>, window_params = [{transform_indices = @transform_0, window_bounds = array<i64: 1, 8, 128>}, {transform_indices = @transform_1, window_bounds = array<i64: 1, 8, 1024>}, {transform_indices = @transform_2, window_bounds = array<i64: 1, 8, 128>}, {transform_indices = @transform_3, window_bounds = array<i64: 1, 8, 128>}, {pipeline_mode = #tpu.pipeline_mode<synchronous>, transform_indices = @transform_4, window_bounds = array<i64: 2368, 128>}, {transform_indices = @transform_5, window_bounds = array<i64: 1, 8, 128>}]} {
    %c0 = arith.constant 0 : index
    %c0_0 = arith.constant 0 : index
    %c0_1 = arith.constant 0 : index
    %0 = vector.load %arg1[%c0, %c0_0, %c0_1] : memref<1x8x128xf32, #tpu.memory_space<vmem>>, vector<1x8x128xf32>
    %1 = vector.shape_cast %0 : vector<1x8x128xf32> to vector<8x128xf32>
    %c0_2 = arith.constant 0 : index
    %c0_3 = arith.constant 0 : index
    %2 = vector.load %arg5[%c0_2, %c0_3] : memref<2368x128xf32, #tpu.memory_space<vmem>>, vector<128x128xf32>
    %cst = arith.constant dense<0.000000e+00> : vector<8x128xf32>
    %3 = tpu.matmul %1, %2, %cst {dimension_numbers = #tpu.dot_dimension_numbers<[1], [0], [0], [1], [0, 0, 1, 1], [], []>} : vector<8x128xf32>, vector<128x128xf32>, vector<8x128xf32> -> vector<8x128xf32>
    %c128 = arith.constant 128 : index
    %c0_4 = arith.constant 0 : index
    %4 = vector.load %arg5[%c128, %c0_4] : memref<2368x128xf32, #tpu.memory_space<vmem>>, vector<8x128xf32>
    %5 = arith.addf %3, %4 : vector<8x128xf32>
    %cst_5 = arith.constant 0.000000e+00 : f32
    %6 = vector.broadcast %cst_5 : f32 to vector<8x128xf32>
    %7 = arith.maximumf %5, %6 : vector<8x128xf32>
    %c136 = arith.constant 136 : index
    %c0_6 = arith.constant 0 : index
    %8 = vector.load %arg5[%c136, %c0_6] : memref<2368x128xf32, #tpu.memory_space<vmem>>, vector<128x128xf32>
    %cst_7 = arith.constant dense<0.000000e+00> : vector<8x128xf32>
    %9 = tpu.matmul %7, %8, %cst_7 {dimension_numbers = #tpu.dot_dimension_numbers<[1], [0], [0], [1], [0, 0, 1, 1], [], []>} : vector<8x128xf32>, vector<128x128xf32>, vector<8x128xf32> -> vector<8x128xf32>
    %c264 = arith.constant 264 : index
    %c0_8 = arith.constant 0 : index
    %10 = vector.load %arg5[%c264, %c0_8] : memref<2368x128xf32, #tpu.memory_space<vmem>>, vector<8x128xf32>
    %11 = arith.addf %9, %10 : vector<8x128xf32>
    %12 = tpu.concatenate %11, %11, %11, %11, %11, %11, %11, %11 in 1 : vector<8x128xf32>, vector<8x128xf32>, vector<8x128xf32>, vector<8x128xf32>, vector<8x128xf32>, vector<8x128xf32>, vector<8x128xf32>, vector<8x128xf32> -> vector<8x1024xf32>
    %c0_9 = arith.constant 0 : index
    %c0_10 = arith.constant 0 : index
    %c0_11 = arith.constant 0 : index
    %13 = vector.load %arg2[%c0_9, %c0_10, %c0_11] : memref<1x8x1024xf32, #tpu.memory_space<vmem>>, vector<1x8x1024xf32>
    %14 = vector.shape_cast %13 : vector<1x8x1024xf32> to vector<8x1024xf32>
    %15 = arith.mulf %14, %12 : vector<8x1024xf32>
    %c272 = arith.constant 272 : index
    %c0_12 = arith.constant 0 : index
    %16 = vector.load %arg5[%c272, %c0_12] : memref<2368x128xf32, #tpu.memory_space<vmem>>, vector<1024x128xf32>
    %cst_13 = arith.constant dense<0.000000e+00> : vector<8x128xf32>
    %17 = tpu.matmul %15, %16, %cst_13 {dimension_numbers = #tpu.dot_dimension_numbers<[1], [0], [0], [1], [0, 0, 1, 1], [], []>} : vector<8x1024xf32>, vector<1024x128xf32>, vector<8x128xf32> -> vector<8x128xf32>
    %cst_14 = arith.constant dense<0.000000e+00> : vector<128xf32>
    %18 = vector.multi_reduction <add>, %17, %cst_14 [0] : vector<8x128xf32> to vector<128xf32>
    %19 = vector.shape_cast %18 : vector<128xf32> to vector<1x128xf32>
    %c0_15 = arith.constant 0 : index
    %c0_16 = arith.constant 0 : index
    %c0_17 = arith.constant 0 : index
    %20 = vector.load %arg3[%c0_15, %c0_16, %c0_17] : memref<1x8x128xf32, #tpu.memory_space<vmem>>, vector<1x8x128xf32>
    %21 = vector.shape_cast %20 : vector<1x8x128xf32> to vector<8x128xf32>
    %c1296 = arith.constant 1296 : index
    %c0_18 = arith.constant 0 : index
    %22 = vector.load %arg5[%c1296, %c0_18] : memref<2368x128xf32, #tpu.memory_space<vmem>>, vector<128x128xf32>
    %cst_19 = arith.constant dense<0.000000e+00> : vector<8x128xf32>
    %23 = tpu.matmul %21, %22, %cst_19 {dimension_numbers = #tpu.dot_dimension_numbers<[1], [0], [0], [1], [0, 0, 1, 1], [], []>} : vector<8x128xf32>, vector<128x128xf32>, vector<8x128xf32> -> vector<8x128xf32>
    %24 = vector.broadcast %19 : vector<1x128xf32> to vector<8x128xf32>
    %25 = arith.addf %24, %23 : vector<8x128xf32>
    %c1424 = arith.constant 1424 : index
    %c0_20 = arith.constant 0 : index
    %26 = vector.load %arg5[%c1424, %c0_20] : memref<2368x128xf32, #tpu.memory_space<vmem>>, vector<8x128xf32>
    %27 = arith.addf %25, %26 : vector<8x128xf32>
    %cst_21 = arith.constant 0.000000e+00 : f32
    %28 = vector.broadcast %cst_21 : f32 to vector<8x128xf32>
    %29 = arith.maximumf %27, %28 : vector<8x128xf32>
    %c1432 = arith.constant 1432 : index
    %c0_22 = arith.constant 0 : index
    %30 = vector.load %arg5[%c1432, %c0_22] : memref<2368x128xf32, #tpu.memory_space<vmem>>, vector<128x128xf32>
    %cst_23 = arith.constant dense<0.000000e+00> : vector<8x128xf32>
    %31 = tpu.matmul %29, %30, %cst_23 {dimension_numbers = #tpu.dot_dimension_numbers<[1], [0], [0], [1], [0, 0, 1, 1], [], []>} : vector<8x128xf32>, vector<128x128xf32>, vector<8x128xf32> -> vector<8x128xf32>
    %c1560 = arith.constant 1560 : index
    %c0_24 = arith.constant 0 : index
    %32 = vector.load %arg5[%c1560, %c0_24] : memref<2368x128xf32, #tpu.memory_space<vmem>>, vector<8x128xf32>
    %33 = arith.addf %31, %32 : vector<8x128xf32>
    %c1568 = arith.constant 1568 : index
    %c0_25 = arith.constant 0 : index
    %34 = vector.load %arg5[%c1568, %c0_25] : memref<2368x128xf32, #tpu.memory_space<vmem>>, vector<128x128xf32>
    %cst_26 = arith.constant dense<0.000000e+00> : vector<8x128xf32>
    %35 = tpu.matmul %33, %34, %cst_26 {dimension_numbers = #tpu.dot_dimension_numbers<[1], [0], [0], [1], [0, 0, 1, 1], [], []>} : vector<8x128xf32>, vector<128x128xf32>, vector<8x128xf32> -> vector<8x128xf32>
    %c0_27 = arith.constant 0 : index
    %c0_28 = arith.constant 0 : index
    %c0_29 = arith.constant 0 : index
    %36 = vector.load %arg4[%c0_27, %c0_28, %c0_29] : memref<1x8x128xf32, #tpu.memory_space<vmem>>, vector<1x8x128xf32>
    %37 = vector.shape_cast %36 : vector<1x8x128xf32> to vector<8x128xf32>
    %c1696 = arith.constant 1696 : index
    %c0_30 = arith.constant 0 : index
    %38 = vector.load %arg5[%c1696, %c0_30] : memref<2368x128xf32, #tpu.memory_space<vmem>>, vector<128x128xf32>
    %cst_31 = arith.constant dense<0.000000e+00> : vector<8x128xf32>
    %39 = tpu.matmul %37, %38, %cst_31 {dimension_numbers = #tpu.dot_dimension_numbers<[1], [0], [0], [1], [0, 0, 1, 1], [], []>} : vector<8x128xf32>, vector<128x128xf32>, vector<8x128xf32> -> vector<8x128xf32>
    %40 = arith.addf %35, %39 : vector<8x128xf32>
    %c1824 = arith.constant 1824 : index
    %c0_32 = arith.constant 0 : index
    %41 = vector.load %arg5[%c1824, %c0_32] : memref<2368x128xf32, #tpu.memory_space<vmem>>, vector<8x128xf32>
    %42 = arith.addf %40, %41 : vector<8x128xf32>
    %cst_33 = arith.constant 0.000000e+00 : f32
    %43 = vector.broadcast %cst_33 : f32 to vector<8x128xf32>
    %44 = arith.maximumf %42, %43 : vector<8x128xf32>
    %c1832 = arith.constant 1832 : index
    %c0_34 = arith.constant 0 : index
    %45 = vector.load %arg5[%c1832, %c0_34] : memref<2368x128xf32, #tpu.memory_space<vmem>>, vector<128x128xf32>
    %cst_35 = arith.constant dense<0.000000e+00> : vector<8x128xf32>
    %46 = tpu.matmul %44, %45, %cst_35 {dimension_numbers = #tpu.dot_dimension_numbers<[1], [0], [0], [1], [0, 0, 1, 1], [], []>} : vector<8x128xf32>, vector<128x128xf32>, vector<8x128xf32> -> vector<8x128xf32>
    %c1960 = arith.constant 1960 : index
    %c0_36 = arith.constant 0 : index
    %47 = vector.load %arg5[%c1960, %c0_36] : memref<2368x128xf32, #tpu.memory_space<vmem>>, vector<8x128xf32>
    %48 = arith.addf %46, %47 : vector<8x128xf32>
    %49 = vector.extract_strided_slice %48 {offsets = [0, 0], sizes = [1, 128], strides = [1, 1]} : vector<8x128xf32> to vector<1x128xf32>
    %50 = vector.shape_cast %49 : vector<1x128xf32> to vector<1x128xf32>
    %51 = vector.broadcast %50 : vector<1x128xf32> to vector<8x128xf32>
    %c2096 = arith.constant 2096 : index
    %c0_37 = arith.constant 0 : index
    %52 = vector.load %arg5[%c2096, %c0_37] : memref<2368x128xf32, #tpu.memory_space<vmem>>, vector<128x128xf32>
    %cst_38 = arith.constant dense<0.000000e+00> : vector<8x128xf32>
    %53 = tpu.matmul %11, %52, %cst_38 {dimension_numbers = #tpu.dot_dimension_numbers<[1], [0], [0], [1], [0, 0, 1, 1], [], []>} : vector<8x128xf32>, vector<128x128xf32>, vector<8x128xf32> -> vector<8x128xf32>
    %c1968 = arith.constant 1968 : index
    %c0_39 = arith.constant 0 : index
    %54 = vector.load %arg5[%c1968, %c0_39] : memref<2368x128xf32, #tpu.memory_space<vmem>>, vector<128x128xf32>
    %cst_40 = arith.constant dense<0.000000e+00> : vector<8x128xf32>
    %55 = tpu.matmul %51, %54, %cst_40 {dimension_numbers = #tpu.dot_dimension_numbers<[1], [0], [0], [1], [0, 0, 1, 1], [], []>} : vector<8x128xf32>, vector<128x128xf32>, vector<8x128xf32> -> vector<8x128xf32>
    %56 = arith.addf %53, %55 : vector<8x128xf32>
    %c2224 = arith.constant 2224 : index
    %c0_41 = arith.constant 0 : index
    %57 = vector.load %arg5[%c2224, %c0_41] : memref<2368x128xf32, #tpu.memory_space<vmem>>, vector<8x128xf32>
    %58 = arith.addf %56, %57 : vector<8x128xf32>
    %cst_42 = arith.constant 0.000000e+00 : f32
    %59 = vector.broadcast %cst_42 : f32 to vector<8x128xf32>
    %60 = arith.maximumf %58, %59 : vector<8x128xf32>
    %c2232 = arith.constant 2232 : index
    %c0_43 = arith.constant 0 : index
    %61 = vector.load %arg5[%c2232, %c0_43] : memref<2368x128xf32, #tpu.memory_space<vmem>>, vector<128x128xf32>
    %cst_44 = arith.constant dense<0.000000e+00> : vector<8x128xf32>
    %62 = tpu.matmul %60, %61, %cst_44 {dimension_numbers = #tpu.dot_dimension_numbers<[1], [0], [0], [1], [0, 0, 1, 1], [], []>} : vector<8x128xf32>, vector<128x128xf32>, vector<8x128xf32> -> vector<8x128xf32>
    %c2360 = arith.constant 2360 : index
    %c0_45 = arith.constant 0 : index
    %63 = vector.load %arg5[%c2360, %c0_45] : memref<2368x128xf32, #tpu.memory_space<vmem>>, vector<8x128xf32>
    %64 = arith.addf %62, %63 : vector<8x128xf32>
    %c0_46 = arith.constant 0 : index
    %c0_47 = arith.constant 0 : index
    %c0_48 = arith.constant 0 : index
    %65 = vector.load %arg6[%c0_46, %c0_47, %c0_48] : memref<1x8x128xf32, #tpu.memory_space<vmem>>, vector<1x8x128xf32>
    %66 = vector.shape_cast %65 : vector<1x8x128xf32> to vector<8x128xf32>
    %67 = vector.shape_cast %64 : vector<8x128xf32> to vector<1x8x128xf32>
    tpu.vector_store %arg6[%c0_46, %c0_47, %c0_48], %67 {strides = array<i32>} : memref<1x8x128xf32, #tpu.memory_space<vmem>>, vector<1x8x128xf32>,
    return
  }
  func.func @transform_0(%arg0: i32) -> (i32, i32, i32) {
    %c0_i32 = arith.constant 0 : i32
    %c0_i32_0 = arith.constant 0 : i32
    %c0_i32_1 = arith.constant 0 : i32
    return %arg0, %c0_i32, %c0_i32_0 : i32, i32, i32
  }
  func.func @transform_1(%arg0: i32) -> (i32, i32, i32) {
    %c0_i32 = arith.constant 0 : i32
    %c0_i32_0 = arith.constant 0 : i32
    %c0_i32_1 = arith.constant 0 : i32
    return %arg0, %c0_i32, %c0_i32_0 : i32, i32, i32
  }
  func.func @transform_2(%arg0: i32) -> (i32, i32, i32) {
    %c0_i32 = arith.constant 0 : i32
    %c0_i32_0 = arith.constant 0 : i32
    %c0_i32_1 = arith.constant 0 : i32
    return %arg0, %c0_i32, %c0_i32_0 : i32, i32, i32
  }
  func.func @transform_3(%arg0: i32) -> (i32, i32, i32) {
    %c0_i32 = arith.constant 0 : i32
    %c0_i32_0 = arith.constant 0 : i32
    %c0_i32_1 = arith.constant 0 : i32
    return %arg0, %c0_i32, %c0_i32_0 : i32, i32, i32
  }
  func.func @transform_4(%arg0: i32) -> (i32, i32) {
    %c0_i32 = arith.constant 0 : i32
    %c0_i32_0 = arith.constant 0 : i32
    %c0_i32_1 = arith.constant 0 : i32
    return %c0_i32, %c0_i32_0 : i32, i32
  }
  func.func @transform_5(%arg0: i32) -> (i32, i32, i32) {
    %c0_i32 = arith.constant 0 : i32
    %c0_i32_0 = arith.constant 0 : i32
    %c0_i32_1 = arith.constant 0 : i32
    return %arg0, %c0_i32, %c0_i32_0 : i32, i32, i32
  }
}

</mosaic_0001>

<bundles_post_ra>
// kernel: _device_forward.1
= control target key start
LH: loop header
LB: loop body
LE: loop exit
PB: predicated region body
PF: predicated region fallthrough
CT: control target
= control target key end

     0   :  { %10 = vsyncpa [#allocation3], 0  ;;  %s2411_s18 = smov [#allocation2]   ;;  %s2606_s0 = inlined_call_operand.vmem [shape: f32[1,8,128], index: 0, kind: input, shape index: {}]   ;;  %s2607_s1 = inlined_call_operand.vmem [shape: f32[1,8,1024], index: 1, kind: input, shape index: {}]   ;;  %s2608_s2 = inlined_call_operand.vmem [shape: f32[1,8,128], index: 2, kind: input, shape index: {}]   ;;  %s2609_s3 = inlined_call_operand.vmem [shape: f32[1,8,128], index: 3, kind: input, shape index: {}]   ;;  %s2610_s4 = inlined_call_operand.hbm [shape: f32[2368,128], index: 4, kind: input, shape index: {}]   ;;  %s2611_s5 = inlined_call_operand.vmem [shape: f32[1,8,128], index: 5, kind: output, shape index: {}]  }
   0x1   :  { %s24_s19 = sshll.u32 %s2411_s18, 4  ;;  %s2387_s22 = scalar_lea.hbm %s2610_s4, 37888  ;;  %s25_s19 = int_to_ptr.vmem [resolvable:$true] %s24_s19 }
   0x2   :  { %p2388_p0 = scmp.ne.s32.totalorder %s2610_s4, %s2387_s22  ;;  %p2391_p1 = scmp.lt.u32.totalorder %s2387_s22, %s2610_s4 }
   0x4   :  { %p2393_p2 = pnand %p2391_p1, %p2388_p0 }
   0x6   :  { %2396 = shalt.err (!%p2393_p2)
}
   0x7   :  { %s2397_s27 = scalar_lea.vmem %s25_s19, 37888  ;;  %p2402_p4 = scmp.lt.s32.totalorder %s25_s19, %s25_s19 }
   0x8   :  { %p2398_p3 = scmp.ne.s32.totalorder %s25_s19, %s2397_s27  ;;  %p2403_p5 = scmp.lt.s32.totalorder %s2397_s27, %s2397_s27 }
   0xa   :  { %p2404_p6 = por %p2403_p5, %p2402_p4 }
   0xc   :  { %p2405_p7 = pnand %p2404_p6, %p2398_p3 }
   0xe   :  { %2408 = shalt.err (!%p2405_p7)
}
   0xf   :  { %s2412_s28 = smov 128   ;;  %s2413_s29 = smov 8  }
  0x10   :  { %30 = dma.hbm_to_vmem [thread:$0]  %s2610_s4, 37888, %s25_s19, [#allocation3], %s2412_s28, %s2412_s28, %s2413_s29  }
  0x11   :  { %2409 = dma.done.wait [#allocation3], 37888  }
  0x12   :  { %2410 = vsyncadd [#allocation3], 4294929408  ;;  %v2414_v0 = vmov 0.0|0.0   ;;  %vm2415_vm0 = vmmov 0   ;;  %v2416_v1 = vmov 0.0   ;;  %v35_v2 = vld [vmem:[#allocation2] sm:$0xff] }
  0x13   :  { %2013 = vmatprep.subr.bf16.mxu0 %v2414_v0  ;;  %1695 = vmatprep.mubr.msk.f32.mxu0 %vm2415_vm0, %v2416_v1  ;;  %v36_v3 = vld [vmem:[#allocation2 + $0x8] sm:$0xff]  ;;  %v37_v4 = vld [vmem:[#allocation2 + $0x10] sm:$0xff]  ;;  %v38_v6 = vld [vmem:[#allocation2 + $0x18] sm:$0xff] }
  0x14   :  { %2037 = vmatprep.subr.bf16.mxu1 %v2414_v0  ;;  %1730 = vmatprep.mubr.msk.f32.mxu1 %vm2415_vm0, %v2416_v1  ;;  %v2014_v5 = vpack.c.bf16 %v36_v3, %v35_v2  ;;  %v2017_v7 = vpack.c.bf16 %v38_v6, %v37_v4  ;;  %v39_v8 = vld [vmem:[#allocation2 + $0x20] sm:$0xff]  ;;  %v40_v9 = vld [vmem:[#allocation2 + $0x28] sm:$0xff]  ;;  %v124_v11 = vld [vmem:[#allocation2 + $0x90] sm:$0xff] }
  0x15   :  { %v123_v10 = vld [vmem:[#allocation2 + $0x88] sm:$0xff]  ;;  %v125_v12 = vld [vmem:[#allocation2 + $0x98] sm:$0xff]  ;;  %v126_v13 = vld [vmem:[#allocation2 + $0xa0] sm:$0xff]  ;;  %v2020_v14 = vpack.c.bf16 %v40_v9, %v39_v8 }
  0x16   :  { %2015 = vmatpush3.bf16.msra.mxu0 %v2014_v5  ;;  %v2038_v15 = vpack.c.bf16 %v124_v11, %v123_v10  ;;  %v41_v16 = vld [vmem:[#allocation2 + $0x30] sm:$0xff]  ;;  %v42_v17 = vld [vmem:[#allocation2 + $0x38] sm:$0xff]  ;;  %v2041_v18 = vpack.c.bf16 %v126_v13, %v125_v12  ;;  %v127_v19 = vld [vmem:[#allocation2 + $0xa8] sm:$0xff] }
  0x17   :  { %2016 = vmatprep.subr.bf16.mxu0 %v2414_v0  ;;  %v128_v20 = vld [vmem:[#allocation2 + $0xb0] sm:$0xff]  ;;  %v2023_v21 = vpack.c.bf16 %v42_v17, %v41_v16  ;;  %v43_v22 = vld [vmem:[#allocation2 + $0x40] sm:$0xff]  ;;  %v44_v23 = vld [vmem:[#allocation2 + $0x48] sm:$0xff] }
  0x18   :  { %2039 = vmatpush3.bf16.msra.mxu1 %v2038_v15  ;;  %v2044_v24 = vpack.c.bf16 %v128_v20, %v127_v19  ;;  %v129_v25 = vld [vmem:[#allocation2 + $0xb8] sm:$0xff]  ;;  %v130_v26 = vld [vmem:[#allocation2 + $0xc0] sm:$0xff]  ;;  %v2026_v27 = vpack.c.bf16 %v44_v23, %v43_v22  ;;  %v45_v28 = vld [vmem:[#allocation2 + $0x50] sm:$0xff] }
  0x19   :  { %2040 = vmatprep.subr.bf16.mxu1 %v2414_v0  ;;  %v46_v29 = vld [vmem:[#allocation2 + $0x58] sm:$0xff]  ;;  %v2047_v30 = vpack.c.bf16 %v130_v26, %v129_v25  ;;  %v131_v31 = vld [vmem:[#allocation2 + $0xc8] sm:$0xff]  ;;  %v132_v32 = vld [vmem:[#allocation2 + $0xd0] sm:$0xff] }
  0x1a   :  { %2018 = vmatpush3.bf16.msra.mxu0 %v2017_v7  ;;  %v2029_v33 = vpack.c.bf16 %v46_v29, %v45_v28  ;;  %v47_v34 = vld [vmem:[#allocation2 + $0x60] sm:$0xff]  ;;  %v48_v35 = vld [vmem:[#allocation2 + $0x68] sm:$0xff]  ;;  %v2050_v36 = vpack.c.bf16 %v132_v32, %v131_v31  ;;  %v133_v37 = vld [vmem:[#allocation2 + $0xd8] sm:$0xff] }
  0x1b   :  { %2019 = vmatprep.subr.bf16.mxu0 %v2414_v0  ;;  %v134_v38 = vld [vmem:[#allocation2 + $0xe0] sm:$0xff]  ;;  %v2032_v39 = vpack.c.bf16 %v48_v35, %v47_v34  ;;  %v49_v40 = vld [vmem:[#allocation2 + $0x70] sm:$0xff]  ;;  %v50_v41 = vld [vmem:[#allocation2 + $0x78] sm:$0xff] }
  0x1c   :  { %2042 = vmatpush3.bf16.msra.mxu1 %v2041_v18  ;;  %v2053_v42 = vpack.c.bf16 %v134_v38, %v133_v37  ;;  %v135_v43 = vld [vmem:[#allocation2 + $0xe8] sm:$0xff]  ;;  %v136_v44 = vld [vmem:[#allocation2 + $0xf0] sm:$0xff]  ;;  %v2035_v45 = vpack.c.bf16 %v50_v41, %v49_v40  ;;  %v34_v47 = vld [vmem:[%s2606_s0] sm:$0xff] }
  0x1d   :  { %2043 = vmatprep.subr.bf16.mxu1 %v2414_v0  ;;  %v2056_v46 = vpack.c.bf16 %v136_v44, %v135_v43  ;;  %v137_v48 = vld [vmem:[#allocation2 + $0xf8] sm:$0xff]  ;;  %v138_v49 = vld [vmem:[#allocation2 + $0x100] sm:$0xff]  ;;  %v242_v51 = vld [vmem:[#allocation2 + $0x190] sm:$0xff] }
  0x1e   :  { %2021 = vmatpush3.bf16.msra.mxu0 %v2020_v14  ;;  %v2059_v50 = vpack.c.bf16 %v138_v49, %v137_v48  ;;  %v243_v52 = vld [vmem:[#allocation2 + $0x198] sm:$0xff]  ;;  %v274_v53 = vld [vmem:[#allocation2 + $0x290] sm:$0xff]  ;;  %v244_v60 = vld [vmem:[#allocation2 + $0x1a0] sm:$0xff] }
  0x1f   :  { %2022 = vmatprep.subr.bf16.mxu0 %v2414_v0  ;;  %v2061_v54 = vpack.c.bf16 %v243_v52, %v242_v51  ;;  %v275_v55 = vld [vmem:[#allocation2 + $0x298] sm:$0xff]  ;;  %v226_v56 = vld [vmem:[#allocation2 + $0x110] sm:$0xff]  ;;  %v245_v61 = vld [vmem:[#allocation2 + $0x1a8] sm:$0xff] }
  0x20   :  { %2045 = vmatpush3.bf16.msra.mxu1 %v2044_v24  ;;  %v227_v57 = vld [vmem:[#allocation2 + $0x118] sm:$0xff]  ;;  %v2093_v58 = vpack.c.bf16 %v275_v55, %v274_v53  ;;  %v2065_v62 = vpack.c.bf16 %v245_v61, %v244_v60  ;;  %v228_v63 = vld [vmem:[#allocation2 + $0x120] sm:$0xff]  ;;  %v229_v2 = vld [vmem:[#allocation2 + $0x128] sm:$0xff] }
  0x21   :  { %2046 = vmatprep.subr.bf16.mxu1 %v2414_v0  ;;  %v2063_v59 = vpack.c.bf16 %v227_v57, %v226_v56  ;;  %v2067_v3 = vpack.c.bf16 %v229_v2, %v228_v63  ;;  %v246_v4 = vld [vmem:[#allocation2 + $0x1b0] sm:$0xff]  ;;  %v247_v5 = vld [vmem:[#allocation2 + $0x1b8] sm:$0xff]  ;;  %v248_v10 = vld [vmem:[#allocation2 + $0x1c0] sm:$0xff] }
  0x22   :  { %2024 = vmatpush3.bf16.msra.mxu0 %v2023_v21  ;;  %v2069_v6 = vpack.c.bf16 %v247_v5, %v246_v4  ;;  %v230_v7 = vld [vmem:[#allocation2 + $0x130] sm:$0xff]  ;;  %v231_v8 = vld [vmem:[#allocation2 + $0x138] sm:$0xff]  ;;  %v249_v11 = vld [vmem:[#allocation2 + $0x1c8] sm:$0xff] }
  0x23   :  { %2025 = vmatprep.subr.bf16.mxu0 %v2414_v0  ;;  %v2071_v9 = vpack.c.bf16 %v231_v8, %v230_v7  ;;  %v2073_v12 = vpack.c.bf16 %v249_v11, %v248_v10  ;;  %v232_v13 = vld [vmem:[#allocation2 + $0x140] sm:$0xff]  ;;  %v233_v14 = vld [vmem:[#allocation2 + $0x148] sm:$0xff]  ;;  %v250_v16 = vld [vmem:[#allocation2 + $0x1d0] sm:$0xff] }
  0x24   :  { %2048 = vmatpush3.bf16.msra.mxu1 %v2047_v30  ;;  %v2075_v15 = vpack.c.bf16 %v233_v14, %v232_v13  ;;  %v251_v17 = vld [vmem:[#allocation2 + $0x1d8] sm:$0xff]  ;;  %v234_v19 = vld [vmem:[#allocation2 + $0x150] sm:$0xff]  ;;  %v252_v22 = vld [vmem:[#allocation2 + $0x1e0] sm:$0xff] }
  0x25   :  { %2049 = vmatprep.subr.bf16.mxu1 %v2414_v0  ;;  %v2077_v18 = vpack.c.bf16 %v251_v17, %v250_v16  ;;  %v235_v20 = vld [vmem:[#allocation2 + $0x158] sm:$0xff]  ;;  %v253_v23 = vld [vmem:[#allocation2 + $0x1e8] sm:$0xff]  ;;  %v236_v25 = vld [vmem:[#allocation2 + $0x160] sm:$0xff] }
  0x26   :  { %2027 = vmatpush3.bf16.msra.mxu0 %v2026_v27  ;;  %v2079_v21 = vpack.c.bf16 %v235_v20, %v234_v19  ;;  %v2081_v24 = vpack.c.bf16 %v253_v23, %v252_v22  ;;  %v237_v26 = vld [vmem:[#allocation2 + $0x168] sm:$0xff]  ;;  %v254_v28 = vld [vmem:[#allocation2 + $0x1f0] sm:$0xff]  ;;  %v255_v29 = vld [vmem:[#allocation2 + $0x1f8] sm:$0xff] }
  0x27   :  { %2028 = vmatprep.subr.bf16.mxu0 %v2414_v0  ;;  %v2083_v27 = vpack.c.bf16 %v237_v26, %v236_v25  ;;  %v2085_v30 = vpack.c.bf16 %v255_v29, %v254_v28  ;;  %v238_v31 = vld [vmem:[#allocation2 + $0x170] sm:$0xff]  ;;  %v239_v32 = vld [vmem:[#allocation2 + $0x178] sm:$0xff]  ;;  %v51_v34 = vld [vmem:[#allocation2 + $0x80] sm:$0xff] }
  0x28   :  { %2051 = vmatpush3.bf16.msra.mxu1 %v2050_v36  ;;  %v258_v35 = vld [vmem:[#allocation2 + $0x210] sm:$0xff]  ;;  %v259_v36 = vld [vmem:[#allocation2 + $0x218] sm:$0xff]  ;;  %v276_v38 = vld [vmem:[#allocation2 + $0x2a0] sm:$0xff] }
  0x29   :  { %2052 = vmatprep.subr.bf16.mxu1 %v2414_v0  ;;  %v279_v48 = vld [vmem:[#allocation2 + $0x2b8] sm:$0xff]  ;;  %v262_v51 = vld [vmem:[#allocation2 + $0x230] sm:$0xff]  ;;  %v280_v53 = vld [vmem:[#allocation2 + $0x2c0] sm:$0xff] }
  0x2a   :  { %2030 = vmatpush3.bf16.msra.mxu0 %v2029_v33  ;;  %v2087_v33 = vpack.c.bf16 %v239_v32, %v238_v31  ;;  %v263_v52 = vld [vmem:[#allocation2 + $0x238] sm:$0xff]  ;;  %v264_v57 = vld [vmem:[#allocation2 + $0x240] sm:$0xff]  ;;  %v266_v63 = vld [vmem:[#allocation2 + $0x250] sm:$0xff] }
  0x2b   :  { %2031 = vmatprep.subr.bf16.mxu0 %v2414_v0  ;;  %v2103_v55 = vpack.c.bf16 %v263_v52, %v262_v51  ;;  %v283_v60 = vld [vmem:[#allocation2 + $0x2d8] sm:$0xff]  ;;  %v285_v4 = vld [vmem:[#allocation2 + $0x2e8] sm:$0xff]  ;;  %v268_v7 = vld [vmem:[#allocation2 + $0x260] sm:$0xff] }
  0x2c   :  { %2054 = vmatpush3.bf16.msra.mxu1 %v2053_v42  ;;  %v2095_v42 = vpack.c.bf16 %v259_v36, %v258_v35  ;;  %v267_v2 = vld [vmem:[#allocation2 + $0x258] sm:$0xff]  ;;  %v269_v8 = vld [vmem:[#allocation2 + $0x268] sm:$0xff]  ;;  %v270_v13 = vld [vmem:[#allocation2 + $0x270] sm:$0xff] }
  0x2d   :  { %2055 = vmatprep.subr.bf16.mxu1 %v2414_v0  ;;  %v2111_v5 = vpack.c.bf16 %v267_v2, %v266_v63  ;;  %v287_v10 = vld [vmem:[#allocation2 + $0x2f8] sm:$0xff]  ;;  %v2115_v11 = vpack.c.bf16 %v269_v8, %v268_v7  ;;  %v256_v16 = vld [vmem:[#allocation2 + $0x200] sm:$0xff]  ;;  %v257_v17 = vld [vmem:[#allocation2 + $0x208] sm:$0xff] }
  0x2e   :  { %2033 = vmatpush3.bf16.msra.mxu0 %v2032_v39  ;;  %v277_v39 = vld [vmem:[#allocation2 + $0x2a8] sm:$0xff]  ;;  %v271_v14 = vld [vmem:[#allocation2 + $0x278] sm:$0xff]  ;;  %v2089_v19 = vpack.c.bf16 %v257_v17, %v256_v16  ;;  %v272_v25 = vld [vmem:[#allocation2 + $0x280] sm:$0xff] }
  0x2f   :  { %2034 = vmatprep.subr.bf16.mxu0 %v2414_v0  ;;  %v2097_v44 = vpack.c.bf16 %v277_v39, %v276_v38  ;;  %v289_v20 = vld [vmem:[#allocation2 + $0x308] sm:$0xff]  ;;  %v306_v28 = vld [vmem:[#allocation2 + $0x390] sm:$0xff]  ;;  %v307_v29 = vld [vmem:[#allocation2 + $0x398] sm:$0xff] }
  0x30   :  { %2057 = vmatpush3.bf16.msra.mxu1 %v2056_v46  ;;  %v261_v46 = vld [vmem:[#allocation2 + $0x228] sm:$0xff]  ;;  %v338_v31 = vld [vmem:[#allocation2 + $0x490] sm:$0xff]  ;;  %v339_v32 = vld [vmem:[#allocation2 + $0x498] sm:$0xff] }
  0x31   :  { %2058 = vmatprep.subr.bf16.mxu1 %v2414_v0  ;;  %v241_v22 = vld [vmem:[#allocation2 + $0x188] sm:$0xff]  ;;  %v290_v36 = vld [vmem:[#allocation2 + $0x310] sm:$0xff]  ;;  %v323_v39 = vld [vmem:[#allocation2 + $0x418] sm:$0xff] }
  0x32   :  { %2036 = vmatpush3.bf16.msra.mxu0 %v2035_v45  ;;  %v260_v45 = vld [vmem:[#allocation2 + $0x220] sm:$0xff]  ;;  %v273_v26 = vld [vmem:[#allocation2 + $0x288] sm:$0xff]  ;;  %v322_v38 = vld [vmem:[#allocation2 + $0x410] sm:$0xff] }
  0x33   :  { %2062 = vmatprep.subr.bf16.mxu0 %v2061_v54  ;;  %v2099_v49 = vpack.c.bf16 %v261_v46, %v260_v45  ;;  %v281_v54 = vld [vmem:[#allocation2 + $0x2c8] sm:$0xff]  ;;  %v340_v51 = vld [vmem:[#allocation2 + $0x4a0] sm:$0xff] }
  0x34   :  { %2060 = vmatpush3.bf16.msra.mxu1 %v2059_v50  ;;  %v2105_v56 = vpack.c.bf16 %v281_v54, %v280_v53  ;;  %v211_v35 = vld [vmem:[%s2607_s1 + $0x8] sm:$0xff]  ;;  %v312_v16 = vld [vmem:[#allocation2 + $0x3c0] sm:$0xff] }
  0x35   :  { %1696 = vmatmul.mubr.f32.vlgmr.msra.gmra.mrb[0].mxu0 %v34_v47  ;;  %2094 = vmatprep.subr.bf16.mxu1 %v2093_v58  ;;  %v278_v47 = vld [vmem:[#allocation2 + $0x2b0] sm:$0xff]  ;;  %v265_v58 = vld [vmem:[#allocation2 + $0x248] sm:$0xff] }
  0x36   :  { %2064 = vmatpush3.bf16.msra.mxu0 %v2063_v59  ;;  %v2101_v50 = vpack.c.bf16 %v279_v48, %v278_v47  ;;  %v282_v59 = vld [vmem:[#allocation2 + $0x2d0] sm:$0xff]  ;;  %v2107_v61 = vpack.c.bf16 %v265_v58, %v264_v57  ;;  %v215_v46 = vld [vmem:[%s2607_s1 + $0x28] sm:$0xff]  ;;  %v308_v47 = vld [vmem:[#allocation2 + $0x3a0] sm:$0xff] }
  0x37   :  { %2066 = vmatprep.subr.bf16.mxu0 %v2065_v62  ;;  %v2109_v62 = vpack.c.bf16 %v283_v60, %v282_v59  ;;  %v341_v52 = vld [vmem:[#allocation2 + $0x4a8] sm:$0xff]  ;;  %v217_v57 = vld [vmem:[%s2607_s1 + $0x38] sm:$0xff]  ;;  %v292_v58 = vld [vmem:[#allocation2 + $0x320] sm:$0xff] }
  0x38   :  { %v293_v59 = vld [vmem:[#allocation2 + $0x328] sm:$0xff]  ;;  %v324_v60 = vld [vmem:[#allocation2 + $0x420] sm:$0xff]  ;;  %v2161_v2 = vpack.c.bf16 %v341_v52, %v340_v51 }
  0x39   :  { %v2131_v8 = vpack.c.bf16 %v293_v59, %v292_v58  ;;  %v313_v17 = vld [vmem:[#allocation2 + $0x3c8] sm:$0xff]  ;;  %v332_v51 = vld [vmem:[#allocation2 + $0x460] sm:$0xff]  ;;  %v302_v59 = vld [vmem:[#allocation2 + $0x370] sm:$0xff] }
  0x3a   :  { %2068 = vmatpush3.bf16.msra.mxu0 %v2067_v3  ;;  %v284_v3 = vld [vmem:[#allocation2 + $0x2e0] sm:$0xff]  ;;  %v333_v52 = vld [vmem:[#allocation2 + $0x468] sm:$0xff] }
  0x3b   :  { %2070 = vmatprep.subr.bf16.mxu0 %v2069_v6  ;;  %v2113_v6 = vpack.c.bf16 %v285_v4, %v284_v3  ;;  %v311_v3 = vld [vmem:[#allocation2 + $0x3b8] sm:$0xff]  ;;  %v342_v4 = vld [vmem:[#allocation2 + $0x4b0] sm:$0xff]  ;;  %v2179_v58 = vpack.c.bf16 %v333_v52, %v332_v51 }
  0x3c   :  { %v734_v51 = vld [vmem:[#allocation2 + $0x5b0] sm:$0xff] }
  0x3e   :  { %2072 = vmatpush3.bf16.msra.mxu0 %v2071_v9  ;;  %v286_v9 = vld [vmem:[#allocation2 + $0x2f0] sm:$0xff] }
  0x3f   :  { %2074 = vmatprep.subr.bf16.mxu0 %v2073_v12  ;;  %v2117_v12 = vpack.c.bf16 %v287_v10, %v286_v9  ;;  %v294_v10 = vld [vmem:[#allocation2 + $0x330] sm:$0xff] }
  0x42   :  { %2076 = vmatpush3.bf16.msra.mxu0 %v2075_v15  ;;  %v2119_v15 = vpack.c.bf16 %v271_v14, %v270_v13  ;;  %v326_v14 = vld [vmem:[#allocation2 + $0x430] sm:$0xff] }
  0x43   :  { %2078 = vmatprep.subr.bf16.mxu0 %v2077_v18  ;;  %v288_v18 = vld [vmem:[#allocation2 + $0x300] sm:$0xff] }
  0x44   :  { %v2121_v23 = vpack.c.bf16 %v289_v20, %v288_v18  ;;  %v344_v18 = vld [vmem:[#allocation2 + $0x4c0] sm:$0xff] }
  0x46   :  { %2080 = vmatpush3.bf16.msra.mxu0 %v2079_v21  ;;  %v240_v21 = vld [vmem:[#allocation2 + $0x180] sm:$0xff] }
  0x47   :  { %2082 = vmatprep.subr.bf16.mxu0 %v2081_v24  ;;  %v2091_v24 = vpack.c.bf16 %v241_v22, %v240_v21  ;;  %v296_v22 = vld [vmem:[#allocation2 + $0x340] sm:$0xff] }
  0x4a   :  { %2084 = vmatpush3.bf16.msra.mxu0 %v2083_v27  ;;  %v2123_v27 = vpack.c.bf16 %v273_v26, %v272_v25  ;;  %v328_v26 = vld [vmem:[#allocation2 + $0x440] sm:$0xff] }
  0x4b   :  { %2086 = vmatprep.subr.bf16.mxu0 %v2085_v30  ;;  %v2125_v30 = vpack.c.bf16 %v307_v29, %v306_v28  ;;  %v314_v28 = vld [vmem:[#allocation2 + $0x3d0] sm:$0xff]  ;;  %v315_v29 = vld [vmem:[#allocation2 + $0x3d8] sm:$0xff] }
  0x4e   :  { %2088 = vmatpush3.bf16.msra.mxu0 %v2087_v33  ;;  %v2157_v33 = vpack.c.bf16 %v339_v32, %v338_v31  ;;  %v347_v31 = vld [vmem:[#allocation2 + $0x4d8] sm:$0xff] }
  0x4f   :  { %2090 = vmatprep.subr.bf16.mxu0 %v2089_v19  ;;  %v345_v19 = vld [vmem:[#allocation2 + $0x4c8] sm:$0xff] }
  0x50   :  { %v2169_v25 = vpack.c.bf16 %v345_v19, %v344_v18  ;;  %v642_v18 = vld [vmem:[#allocation2 + $0x518] sm:$0xff]  ;;  %v214_v19 = vld [vmem:[%s2607_s1 + $0x20] sm:$0xff] }
  0x52   :  { %2092 = vmatpush3.bf16.msra.mxu0 %v2091_v24  ;;  %v2137_v24 = vpack.c.bf16 %v313_v17, %v312_v16  ;;  %v641_v17 = vld [vmem:[#allocation2 + $0x510] sm:$0xff] }
  0x53   :  { %2126 = vmatprep.subr.bf16.mxu0 %v2125_v30  ;;  %v346_v30 = vld [vmem:[#allocation2 + $0x4d0] sm:$0xff] }
 0x108   :  { %v118_v37 = vpop.f32.mrb[0].mxu0 }
 0x109   :  { %v119_v40 = vadd.f32 %v118_v37, %v51_v34  ;;  %v1697_v41 = vpop.f32.mrb[1].mxu0  ;;  %v139_v34 = vld [vmem:[#allocation2 + $0x108] sm:$0xff]  ;;  %v291_v37 = vld [vmem:[#allocation2 + $0x318] sm:$0xff] }
 0x10a   :  { %v213_v41 = vld [vmem:[%s2607_s1 + $0x18] sm:$0xff]  ;;  %v2127_v48 = vpack.c.bf16 %v291_v37, %v290_v36  ;;  %v2141_v36 = vpack.c.bf16 %v315_v29, %v314_v28  ;;  %v2173_v37 = vpack.c.bf16 %v347_v31, %v346_v30  ;;  %v647_v30 = vld [vmem:[#allocation2 + $0x540] sm:$0xff]  ;;  %v648_v31 = vld [vmem:[#allocation2 + $0x548] sm:$0xff] }
 0x10b   :  { %v122_v43 = vmax.f32 %v119_v40, 0.0  ;;  %v646_v28 = vld [vmem:[#allocation2 + $0x538] sm:$0xff] }
 0x10d   :  { %1731 = vmatmul.mubr.f32.vlgmr.msra.gmra.mrb[0].mxu1 %v122_v43  ;;  %v212_v43 = vld [vmem:[%s2607_s1 + $0x10] sm:$0xff] }
 0x10e   :  { %2096 = vmatpush3.bf16.msra.mxu1 %v2095_v42  ;;  %v210_v42 = vld [vmem:[%s2607_s1] sm:$0xff] }
 0x10f   :  { %2098 = vmatprep.subr.bf16.mxu1 %v2097_v44 }
 0x112   :  { %2100 = vmatpush3.bf16.msra.mxu1 %v2099_v49  ;;  %v2159_v49 = vpack.c.bf16 %v323_v39, %v322_v38  ;;  %v330_v38 = vld [vmem:[#allocation2 + $0x450] sm:$0xff]  ;;  %v331_v39 = vld [vmem:[#allocation2 + $0x458] sm:$0xff] }
 0x113   :  { %2102 = vmatprep.subr.bf16.mxu1 %v2101_v50  ;;  %v309_v50 = vld [vmem:[#allocation2 + $0x3a8] sm:$0xff] }
 0x114   :  { %v2129_v63 = vpack.c.bf16 %v309_v50, %v308_v47  ;;  %v300_v47 = vld [vmem:[#allocation2 + $0x360] sm:$0xff] }
 0x116   :  { %2104 = vmatpush3.bf16.msra.mxu1 %v2103_v55 }
 0x117   :  { %2106 = vmatprep.subr.bf16.mxu1 %v2105_v56 }
 0x11a   :  { %2108 = vmatpush3.bf16.msra.mxu1 %v2107_v61  ;;  %v325_v61 = vld [vmem:[#allocation2 + $0x428] sm:$0xff] }
 0x11b   :  { %2110 = vmatprep.subr.bf16.mxu1 %v2109_v62  ;;  %v310_v62 = vld [vmem:[#allocation2 + $0x3b0] sm:$0xff]  ;;  %v2163_v9 = vpack.c.bf16 %v325_v61, %v324_v60  ;;  %v303_v60 = vld [vmem:[#allocation2 + $0x378] sm:$0xff] }
 0x11e   :  { %2112 = vmatpush3.bf16.msra.mxu1 %v2111_v5  ;;  %v343_v5 = vld [vmem:[#allocation2 + $0x4b8] sm:$0xff] }
 0x11f   :  { %2114 = vmatprep.subr.bf16.mxu1 %v2113_v6  ;;  %v2165_v13 = vpack.c.bf16 %v343_v5, %v342_v4  ;;  %v321_v4 = vld [vmem:[#allocation2 + $0x408] sm:$0xff]  ;;  %v352_v5 = vld [vmem:[#allocation2 + $0x500] sm:$0xff] }
 0x122   :  { %2116 = vmatpush3.bf16.msra.mxu1 %v2115_v11  ;;  %v295_v11 = vld [vmem:[#allocation2 + $0x338] sm:$0xff] }
 0x123   :  { %2118 = vmatprep.subr.bf16.mxu1 %v2117_v12  ;;  %v2133_v12 = vpack.c.bf16 %v311_v3, %v310_v62  ;;  %v2135_v20 = vpack.c.bf16 %v295_v11, %v294_v10  ;;  %v320_v3 = vld [vmem:[#allocation2 + $0x400] sm:$0xff] }
 0x124   :  { %v2153_v10 = vpack.c.bf16 %v321_v4, %v320_v3  ;;  %v743_v3 = vld [vmem:[#allocation2 + $0x5f8] sm:$0xff]  ;;  %v744_v4 = vld [vmem:[#allocation2 + $0x600] sm:$0xff] }
 0x126   :  { %2120 = vmatpush3.bf16.msra.mxu1 %v2119_v15  ;;  %v327_v15 = vld [vmem:[#allocation2 + $0x438] sm:$0xff] }
 0x127   :  { %2122 = vmatprep.subr.bf16.mxu1 %v2121_v23  ;;  %v2167_v21 = vpack.c.bf16 %v327_v15, %v326_v14  ;;  %v297_v23 = vld [vmem:[#allocation2 + $0x348] sm:$0xff] }
 0x128   :  { %v2139_v32 = vpack.c.bf16 %v297_v23, %v296_v22  ;;  %v337_v14 = vld [vmem:[#allocation2 + $0x488] sm:$0xff] }
 0x12a   :  { %2124 = vmatpush3.bf16.msra.mxu1 %v2123_v27  ;;  %v329_v27 = vld [vmem:[#allocation2 + $0x448] sm:$0xff] }
 0x12b   :  { %2158 = vmatprep.subr.bf16.mxu1 %v2157_v33  ;;  %v2171_v33 = vpack.c.bf16 %v329_v27, %v328_v26  ;;  %v645_v27 = vld [vmem:[#allocation2 + $0x530] sm:$0xff] }
 0x12c   :  { %v2196_v29 = vpack.c.bf16 %v646_v28, %v645_v27  ;;  %v847_v27 = vld [vmem:[#allocation2 + $0x700] sm:$0xff]  ;;  %v848_v28 = vld [vmem:[#allocation2 + $0x708] sm:$0xff] }
 0x1e0   :  { %v206_v40 = vpop.f32.mrb[0].mxu1 }
 0x1e1   :  { %v2494_v44 = vadd.f32 %v206_v40, %v139_v34  ;;  %v1732_v45 = vpop.f32.mrb[1].mxu1  ;;  %v298_v34 = vld [vmem:[#allocation2 + $0x350] sm:$0xff]  ;;  %v316_v40 = vld [vmem:[#allocation2 + $0x3e0] sm:$0xff] }
 0x1e3   :  { %v219_v53 = vmul.f32 %v211_v35, %v2494_v44  ;;  %v221_v54 = vmul.f32 %v213_v41, %v2494_v44  ;;  %v218_v55 = vmul.f32 %v210_v42, %v2494_v44  ;;  %v220_v56 = vmul.f32 %v212_v43, %v2494_v44  ;;  %v299_v35 = vld [vmem:[#allocation2 + $0x358] sm:$0xff]  ;;  %v317_v41 = vld [vmem:[#allocation2 + $0x3e8] sm:$0xff]  ;;  %v348_v42 = vld [vmem:[#allocation2 + $0x4e0] sm:$0xff] }
 0x1e4   :  { %v223_v6 = vmul.f32 %v215_v46, %v2494_v44  ;;  %v225_v7 = vmul.f32 %v217_v57, %v2494_v44  ;;  %v349_v43 = vld [vmem:[#allocation2 + $0x4e8] sm:$0xff]  ;;  %v2143_v45 = vpack.c.bf16 %v299_v35, %v298_v34  ;;  %v2175_v46 = vpack.c.bf16 %v331_v39, %v330_v38  ;;  %v650_v34 = vld [vmem:[#allocation2 + $0x558] sm:$0xff]  ;;  %v653_v39 = vld [vmem:[#allocation2 + $0x570] sm:$0xff] }
 0x1e5   :  { %418 = vmatprep.mubr.f32.mxu0 %v219_v53  ;;  %488 = vmatprep.mubr.f32.mxu1 %v221_v54  ;;  %v2177_v50 = vpack.c.bf16 %v349_v43, %v348_v42  ;;  %v318_v53 = vld [vmem:[#allocation2 + $0x3f0] sm:$0xff]  ;;  %v319_v54 = vld [vmem:[#allocation2 + $0x3f8] sm:$0xff]  ;;  %v222_v22 = vmul.f32 %v214_v19, %v2494_v44  ;;  %v655_v42 = vld [vmem:[#allocation2 + $0x580] sm:$0xff] }
 0x1e6   :  { %419 = vmatmul.mubr.f32.vlgmr.msra.gmra.mrb[2].mxu0 %v218_v55  ;;  %489 = vmatmul.mubr.f32.vlgmr.msra.gmra.mrb[2].mxu1 %v220_v56  ;;  %v350_v55 = vld [vmem:[#allocation2 + $0x4f0] sm:$0xff]  ;;  %v351_v56 = vld [vmem:[#allocation2 + $0x4f8] sm:$0xff]  ;;  %v2149_v61 = vpack.c.bf16 %v319_v54, %v318_v53  ;;  %v656_v43 = vld [vmem:[#allocation2 + $0x588] sm:$0xff] }
 0x1e7   :  { %2128 = vmatpush3.bf16.msra.mxu0 %v2127_v48  ;;  %2160 = vmatpush3.bf16.msra.mxu1 %v2159_v49  ;;  %v301_v48 = vld [vmem:[#allocation2 + $0x368] sm:$0xff]  ;;  %v2145_v49 = vpack.c.bf16 %v317_v41, %v316_v40  ;;  %v2181_v62 = vpack.c.bf16 %v351_v56, %v350_v55  ;;  %v654_v40 = vld [vmem:[#allocation2 + $0x578] sm:$0xff]  ;;  %v736_v54 = vld [vmem:[#allocation2 + $0x5c0] sm:$0xff] }
 0x1e8   :  { %558 = vmatprep.mubr.f32.mxu0 %v223_v6  ;;  %628 = vmatprep.mubr.f32.mxu1 %v225_v7  ;;  %v2147_v57 = vpack.c.bf16 %v301_v48, %v300_v47  ;;  %v353_v6 = vld [vmem:[#allocation2 + $0x508] sm:$0xff]  ;;  %v2151_v7 = vpack.c.bf16 %v303_v60, %v302_v59  ;;  %v2208_v41 = vpack.c.bf16 %v654_v40, %v653_v39  ;;  %v731_v47 = vld [vmem:[#allocation2 + $0x598] sm:$0xff]  ;;  %v732_v48 = vld [vmem:[#allocation2 + $0x5a0] sm:$0xff] }
 0x1e9   :  { %2130 = vmatprep.subr.bf16.mxu0 %v2129_v63  ;;  %2162 = vmatprep.subr.bf16.mxu1 %v2161_v2  ;;  %v334_v63 = vld [vmem:[#allocation2 + $0x470] sm:$0xff]  ;;  %v335_v2 = vld [vmem:[#allocation2 + $0x478] sm:$0xff]  ;;  %v2185_v11 = vpack.c.bf16 %v353_v6, %v352_v5  ;;  %v737_v56 = vld [vmem:[#allocation2 + $0x5c8] sm:$0xff]  ;;  %v2232_v5 = vpack.c.bf16 %v744_v4, %v743_v3 }
 0x1ea   :  { %v735_v53 = vld [vmem:[#allocation2 + $0x5b8] sm:$0xff]  ;;  %v740_v60 = vld [vmem:[#allocation2 + $0x5e0] sm:$0xff]  ;;  %v745_v6 = vld [vmem:[#allocation2 + $0x608] sm:$0xff] }
 0x1eb   :  { %2132 = vmatpush3.bf16.msra.mxu0 %v2131_v8  ;;  %2164 = vmatpush3.bf16.msra.mxu1 %v2163_v9  ;;  %v2183_v8 = vpack.c.bf16 %v335_v2, %v334_v63  ;;  %v304_v9 = vld [vmem:[#allocation2 + $0x380] sm:$0xff]  ;;  %v2220_v55 = vpack.c.bf16 %v736_v54, %v735_v53  ;;  %v739_v59 = vld [vmem:[#allocation2 + $0x5d8] sm:$0xff]  ;;  %v742_v63 = vld [vmem:[#allocation2 + $0x5f0] sm:$0xff] }
 0x1ec   :  { %2134 = vmatprep.subr.bf16.mxu0 %v2133_v12  ;;  %2166 = vmatprep.subr.bf16.mxu1 %v2165_v13  ;;  %v305_v12 = vld [vmem:[#allocation2 + $0x388] sm:$0xff]  ;;  %v336_v13 = vld [vmem:[#allocation2 + $0x480] sm:$0xff]  ;;  %v842_v19 = vld [vmem:[#allocation2 + $0x6d8] sm:$0xff] }
 0x1ed   :  { %v2155_v15 = vpack.c.bf16 %v305_v12, %v304_v9  ;;  %v2187_v16 = vpack.c.bf16 %v337_v14, %v336_v13  ;;  %v835_v9 = vld [vmem:[#allocation2 + $0x6a0] sm:$0xff]  ;;  %v837_v12 = vld [vmem:[#allocation2 + $0x6b0] sm:$0xff]  ;;  %v838_v13 = vld [vmem:[#allocation2 + $0x6b8] sm:$0xff] }
 0x1ee   :  { %v2241_v14 = vpack.c.bf16 %v838_v13, %v837_v12  ;;  %v821_v3 = vld [vmem:[#allocation2 + $0x638] sm:$0xff]  ;;  %v827_v12 = vld [vmem:[#allocation2 + $0x668] sm:$0xff] }
 0x1ef   :  { %2136 = vmatpush3.bf16.msra.mxu0 %v2135_v20  ;;  %2168 = vmatpush3.bf16.msra.mxu1 %v2167_v21  ;;  %v216_v20 = vld [vmem:[%s2607_s1 + $0x30] sm:$0xff]  ;;  %v2190_v21 = vpack.c.bf16 %v642_v18, %v641_v17 }
 0x1f0   :  { %2138 = vmatprep.subr.bf16.mxu0 %v2137_v24  ;;  %2170 = vmatprep.subr.bf16.mxu1 %v2169_v25  ;;  %v224_v23 = vmul.f32 %v216_v20, %v2494_v44  ;;  %v643_v24 = vld [vmem:[#allocation2 + $0x520] sm:$0xff]  ;;  %v644_v25 = vld [vmem:[#allocation2 + $0x528] sm:$0xff]  ;;  %v841_v18 = vld [vmem:[#allocation2 + $0x6d0] sm:$0xff] }
 0x1f1   :  { %v2193_v26 = vpack.c.bf16 %v644_v25, %v643_v24  ;;  %v2247_v20 = vpack.c.bf16 %v842_v19, %v841_v18  ;;  %v845_v24 = vld [vmem:[#allocation2 + $0x6f0] sm:$0xff]  ;;  %v846_v25 = vld [vmem:[#allocation2 + $0x6f8] sm:$0xff]  ;;  %v831_v18 = vld [vmem:[#allocation2 + $0x688] sm:$0xff] }
 0x1f3   :  { %2140 = vmatpush3.bf16.msra.mxu0 %v2139_v32  ;;  %2172 = vmatpush3.bf16.msra.mxu1 %v2171_v33  ;;  %v2199_v32 = vpack.c.bf16 %v648_v31, %v647_v30  ;;  %v649_v33 = vld [vmem:[#allocation2 + $0x550] sm:$0xff]  ;;  %v850_v31 = vld [vmem:[#allocation2 + $0x718] sm:$0xff] }
 0x1f4   :  { %2142 = vmatprep.subr.bf16.mxu0 %v2141_v36  ;;  %2174 = vmatprep.subr.bf16.mxu1 %v2173_v37  ;;  %v2202_v35 = vpack.c.bf16 %v650_v34, %v649_v33  ;;  %v651_v36 = vld [vmem:[#allocation2 + $0x560] sm:$0xff]  ;;  %v652_v37 = vld [vmem:[#allocation2 + $0x568] sm:$0xff]  ;;  %v849_v30 = vld [vmem:[#allocation2 + $0x710] sm:$0xff] }
 0x1f5   :  { %v2205_v38 = vpack.c.bf16 %v652_v37, %v651_v36 }
 0x1f7   :  { %2144 = vmatpush3.bf16.msra.mxu0 %v2143_v45  ;;  %2176 = vmatpush3.bf16.msra.mxu1 %v2175_v46  ;;  %v2211_v45 = vpack.c.bf16 %v656_v43, %v655_v42  ;;  %v640_v46 = vld [vmem:[%s2608_s2] sm:$0xff] }
 0x1f8   :  { %2146 = vmatprep.subr.bf16.mxu0 %v2145_v49  ;;  %2178 = vmatprep.subr.bf16.mxu1 %v2177_v50  ;;  %v2214_v49 = vpack.c.bf16 %v732_v48, %v731_v47  ;;  %v733_v50 = vld [vmem:[#allocation2 + $0x5a8] sm:$0xff] }
 0x1f9   :  { %v2217_v52 = vpack.c.bf16 %v734_v51, %v733_v50 }
 0x1fb   :  { %2148 = vmatpush3.bf16.msra.mxu0 %v2147_v57  ;;  %2180 = vmatpush3.bf16.msra.mxu1 %v2179_v58  ;;  %v738_v57 = vld [vmem:[#allocation2 + $0x5d0] sm:$0xff] }
 0x1fc   :  { %2150 = vmatprep.subr.bf16.mxu0 %v2149_v61  ;;  %2182 = vmatprep.subr.bf16.mxu1 %v2181_v62  ;;  %v2223_v58 = vpack.c.bf16 %v738_v57, %v737_v56  ;;  %v2226_v61 = vpack.c.bf16 %v740_v60, %v739_v59  ;;  %v741_v62 = vld [vmem:[#allocation2 + $0x5e8] sm:$0xff]  ;;  %v728_v56 = vld [vmem:[#allocation2 + $0x590] sm:$0xff]  ;;  %v818_v59 = vld [vmem:[#allocation2 + $0x620] sm:$0xff] }
 0x1fd   :  { %v2229_v2 = vpack.c.bf16 %v742_v63, %v741_v62  ;;  %v819_v60 = vld [vmem:[#allocation2 + $0x628] sm:$0xff] }
 0x1fe   :  { %v2262_v62 = vpack.c.bf16 %v819_v60, %v818_v59  ;;  %v1104_v59 = vld [vmem:[#allocation2 + $0x7c8] sm:$0xff] }
 0x1ff   :  { %2152 = vmatpush3.bf16.msra.mxu0 %v2151_v7  ;;  %2184 = vmatpush3.bf16.msra.mxu1 %v2183_v8  ;;  %v746_v7 = vld [vmem:[#allocation2 + $0x610] sm:$0xff] }
 0x200   :  { %2154 = vmatprep.subr.bf16.mxu0 %v2153_v10  ;;  %2186 = vmatprep.subr.bf16.mxu1 %v2185_v11  ;;  %v2235_v8 = vpack.c.bf16 %v746_v7, %v745_v6  ;;  %v836_v10 = vld [vmem:[#allocation2 + $0x6a8] sm:$0xff] }
 0x201   :  { %v2238_v11 = vpack.c.bf16 %v836_v10, %v835_v9  ;;  %v823_v6 = vld [vmem:[#allocation2 + $0x648] sm:$0xff]  ;;  %v825_v9 = vld [vmem:[#allocation2 + $0x658] sm:$0xff] }
 0x203   :  { %2156 = vmatpush3.bf16.msra.mxu0 %v2155_v15  ;;  %2188 = vmatpush3.bf16.msra.mxu1 %v2187_v16  ;;  %v839_v15 = vld [vmem:[#allocation2 + $0x6c0] sm:$0xff]  ;;  %v840_v16 = vld [vmem:[#allocation2 + $0x6c8] sm:$0xff] }
 0x204   :  { %2189 = vmatprep.subr.bf16.mxu0 %v2414_v0  ;;  %2213 = vmatprep.subr.bf16.mxu1 %v2414_v0  ;;  %v2244_v17 = vpack.c.bf16 %v840_v16, %v839_v15  ;;  %v829_v15 = vld [vmem:[#allocation2 + $0x678] sm:$0xff] }
 0x206   :  { %559 = vmatmul.mubr.f32.vlgmr.msra.gmra.mrb[4].mxu0 %v222_v22  ;;  %629 = vmatmul.mubr.f32.vlgmr.msra.gmra.mrb[4].mxu1 %v224_v23  ;;  %v844_v22 = vld [vmem:[#allocation2 + $0x6e8] sm:$0xff] }
 0x207   :  { %2191 = vmatpush3.bf16.msra.mxu0 %v2190_v21  ;;  %1765 = vmatprep.mubr.msk.f32.mxu0 %vm2415_vm0, %v2416_v1  ;;  %v843_v21 = vld [vmem:[#allocation2 + $0x6e0] sm:$0xff] }
 0x208   :  { %2192 = vmatprep.subr.bf16.mxu0 %v2414_v0  ;;  %1800 = vmatprep.mubr.msk.f32.mxu1 %vm2415_vm0, %v2416_v1  ;;  %v2250_v23 = vpack.c.bf16 %v844_v22, %v843_v21  ;;  %v833_v21 = vld [vmem:[#allocation2 + $0x698] sm:$0xff] }
 0x209   :  { %2215 = vmatpush3.bf16.msra.mxu1 %v2214_v49 }
 0x20a   :  { %2216 = vmatprep.subr.bf16.mxu1 %v2414_v0 }
 0x20b   :  { %2194 = vmatpush3.bf16.msra.mxu0 %v2193_v26  ;;  %v2253_v26 = vpack.c.bf16 %v846_v25, %v845_v24  ;;  %v994_v24 = vld [vmem:[#allocation2 + $0x728] sm:$0xff]  ;;  %v995_v25 = vld [vmem:[#allocation2 + $0x730] sm:$0xff] }
 0x20c   :  { %2195 = vmatprep.subr.bf16.mxu0 %v2414_v0 }
 0x20d   :  { %2218 = vmatpush3.bf16.msra.mxu1 %v2217_v52 }
 0x20e   :  { %2219 = vmatprep.subr.bf16.mxu1 %v2414_v0 }
 0x20f   :  { %2197 = vmatpush3.bf16.msra.mxu0 %v2196_v29  ;;  %v2256_v29 = vpack.c.bf16 %v848_v28, %v847_v27  ;;  %v2286_v27 = vpack.c.bf16 %v995_v25, %v994_v24  ;;  %v997_v28 = vld [vmem:[#allocation2 + $0x740] sm:$0xff]  ;;  %v1088_v24 = vld [vmem:[#allocation2 + $0x848] sm:$0xff] }
 0x210   :  { %2198 = vmatprep.subr.bf16.mxu0 %v2414_v0 }
 0x211   :  { %2221 = vmatpush3.bf16.msra.mxu1 %v2220_v55 }
 0x212   :  { %2222 = vmatprep.subr.bf16.mxu1 %v2414_v0 }
 0x213   :  { %2200 = vmatpush3.bf16.msra.mxu0 %v2199_v32  ;;  %v2259_v32 = vpack.c.bf16 %v850_v31, %v849_v30  ;;  %v998_v30 = vld [vmem:[#allocation2 + $0x748] sm:$0xff]  ;;  %v999_v31 = vld [vmem:[#allocation2 + $0x750] sm:$0xff] }
 0x214   :  { %2201 = vmatprep.subr.bf16.mxu0 %v2414_v0 }
 0x215   :  { %2224 = vmatpush3.bf16.msra.mxu1 %v2223_v58 }
 0x216   :  { %2225 = vmatprep.subr.bf16.mxu1 %v2414_v0 }
 0x217   :  { %2203 = vmatpush3.bf16.msra.mxu0 %v2202_v35 }
 0x218   :  { %2204 = vmatprep.subr.bf16.mxu0 %v2414_v0 }
 0x219   :  { %2227 = vmatpush3.bf16.msra.mxu1 %v2226_v61 }
 0x21a   :  { %2228 = vmatprep.subr.bf16.mxu1 %v2414_v0 }
 0x21b   :  { %2206 = vmatpush3.bf16.msra.mxu0 %v2205_v38 }
 0x21c   :  { %2207 = vmatprep.subr.bf16.mxu0 %v2414_v0 }
 0x21d   :  { %2230 = vmatpush3.bf16.msra.mxu1 %v2229_v2  ;;  %v820_v2 = vld [vmem:[#allocation2 + $0x630] sm:$0xff] }
 0x21e   :  { %2231 = vmatprep.subr.bf16.mxu1 %v2414_v0  ;;  %v2265_v4 = vpack.c.bf16 %v821_v3, %v820_v2  ;;  %v1107_v2 = vld [vmem:[#allocation2 + $0x7e0] sm:$0xff]  ;;  %v1108_v3 = vld [vmem:[#allocation2 + $0x7e8] sm:$0xff] }
 0x21f   :  { %2209 = vmatpush3.bf16.msra.mxu0 %v2208_v41 }
 0x220   :  { %2210 = vmatprep.subr.bf16.mxu0 %v2414_v0 }
 0x221   :  { %2233 = vmatpush3.bf16.msra.mxu1 %v2232_v5  ;;  %v822_v5 = vld [vmem:[#allocation2 + $0x640] sm:$0xff] }
 0x222   :  { %2234 = vmatprep.subr.bf16.mxu1 %v2414_v0  ;;  %v2268_v7 = vpack.c.bf16 %v823_v6, %v822_v5  ;;  %v1109_v5 = vld [vmem:[#allocation2 + $0x7f0] sm:$0xff]  ;;  %v1110_v6 = vld [vmem:[#allocation2 + $0x7f8] sm:$0xff] }
 0x223   :  { %2212 = vmatpush3.bf16.msra.mxu0 %v2211_v45 }
 0x224   :  { %2237 = vmatprep.subr.bf16.mxu0 %v2414_v0 }
 0x225   :  { %2236 = vmatpush3.bf16.msra.mxu1 %v2235_v8  ;;  %v824_v8 = vld [vmem:[#allocation2 + $0x650] sm:$0xff] }
 0x226   :  { %1766 = vmatmul.mubr.f32.vlgmr.msra.gmra.mrb[6].mxu0 %v640_v46  ;;  %2261 = vmatprep.subr.bf16.mxu1 %v2414_v0  ;;  %v2271_v10 = vpack.c.bf16 %v825_v9, %v824_v8  ;;  %v1111_v8 = vld [vmem:[#allocation2 + $0x800] sm:$0xff]  ;;  %v1112_v9 = vld [vmem:[#allocation2 + $0x808] sm:$0xff] }
 0x227   :  { %1835 = vmatprep.mubr.msk.f32.mxu0 %vm2415_vm0, %v2416_v1  ;;  %2239 = vmatpush3.bf16.msra.mxu0 %v2238_v11  ;;  %v826_v11 = vld [vmem:[#allocation2 + $0x660] sm:$0xff] }
 0x228   :  { %2240 = vmatprep.subr.bf16.mxu0 %v2414_v0  ;;  %v2274_v13 = vpack.c.bf16 %v827_v12, %v826_v11  ;;  %v1113_v11 = vld [vmem:[#allocation2 + $0x810] sm:$0xff]  ;;  %v1114_v12 = vld [vmem:[#allocation2 + $0x818] sm:$0xff] }
 0x22b   :  { %2242 = vmatpush3.bf16.msra.mxu0 %v2241_v14  ;;  %v828_v14 = vld [vmem:[#allocation2 + $0x670] sm:$0xff] }
 0x22c   :  { %2243 = vmatprep.subr.bf16.mxu0 %v2414_v0  ;;  %v2277_v16 = vpack.c.bf16 %v829_v15, %v828_v14  ;;  %v991_v15 = vld [vmem:[#allocation2 + $0x720] sm:$0xff] }
 0x22f   :  { %2245 = vmatpush3.bf16.msra.mxu0 %v2244_v17  ;;  %v830_v17 = vld [vmem:[#allocation2 + $0x680] sm:$0xff] }
 0x230   :  { %2246 = vmatprep.subr.bf16.mxu0 %v2414_v0  ;;  %v2280_v19 = vpack.c.bf16 %v831_v18, %v830_v17  ;;  %v1085_v18 = vld [vmem:[#allocation2 + $0x830] sm:$0xff] }
 0x233   :  { %2248 = vmatpush3.bf16.msra.mxu0 %v2247_v20  ;;  %v832_v20 = vld [vmem:[#allocation2 + $0x690] sm:$0xff] }
 0x234   :  { %2249 = vmatprep.subr.bf16.mxu0 %v2414_v0  ;;  %v2283_v22 = vpack.c.bf16 %v833_v21, %v832_v20 }
 0x237   :  { %2251 = vmatpush3.bf16.msra.mxu0 %v2250_v23  ;;  %v834_v23 = vld [vmem:[%s2609_s3] sm:$0xff] }
 0x238   :  { %2252 = vmatprep.subr.bf16.mxu0 %v2414_v0 }
 0x23b   :  { %2254 = vmatpush3.bf16.msra.mxu0 %v2253_v26  ;;  %v996_v26 = vld [vmem:[#allocation2 + $0x738] sm:$0xff] }
 0x23c   :  { %2255 = vmatprep.subr.bf16.mxu0 %v2414_v0 }
 0x23f   :  { %2257 = vmatpush3.bf16.msra.mxu0 %v2256_v29  ;;  %v2289_v29 = vpack.c.bf16 %v997_v28, %v996_v26  ;;  %v1089_v26 = vld [vmem:[#allocation2 + $0x850] sm:$0xff] }
 0x240   :  { %2258 = vmatprep.subr.bf16.mxu0 %v2414_v0 }
 0x243   :  { %2260 = vmatpush3.bf16.msra.mxu0 %v2259_v32  ;;  %v2292_v32 = vpack.c.bf16 %v999_v31, %v998_v30  ;;  %v1092_v30 = vld [vmem:[#allocation2 + $0x868] sm:$0xff] }
 0x244   :  { %2285 = vmatprep.subr.bf16.mxu0 %v2414_v0 }
 0x246   :  { %1836 = vmatmul.mubr.f32.vlgmr.msra.gmra.mrb[8].mxu0 %v834_v23  ;;  %v1087_v23 = vld [vmem:[#allocation2 + $0x840] sm:$0xff] }
 0x247   :  { %1905 = vmatprep.mubr.msk.f32.mxu0 %vm2415_vm0, %v2416_v1  ;;  %2287 = vmatpush3.bf16.msra.mxu0 %v2286_v27  ;;  %v2337_v25 = vpack.c.bf16 %v1088_v24, %v1087_v23  ;;  %v1090_v27 = vld [vmem:[#allocation2 + $0x858] sm:$0xff] }
 0x248   :  { %2288 = vmatprep.subr.bf16.mxu0 %v2414_v0  ;;  %v2340_v28 = vpack.c.bf16 %v1090_v27, %v1089_v26  ;;  %v1276_v24 = vld [vmem:[#allocation2 + $0x938] sm:$0xff] }
 0x24b   :  { %2290 = vmatpush3.bf16.msra.mxu0 %v2289_v29  ;;  %v1091_v29 = vld [vmem:[#allocation2 + $0x860] sm:$0xff] }
 0x24c   :  { %2291 = vmatprep.subr.bf16.mxu0 %v2414_v0  ;;  %v2343_v31 = vpack.c.bf16 %v1092_v30, %v1091_v29 }
 0x24f   :  { %2293 = vmatpush3.bf16.msra.mxu0 %v2292_v32  ;;  %v1093_v32 = vld [vmem:[#allocation2 + $0x870] sm:$0xff] }
 0x250   :  { %2294 = vmatprep.subr.bf16.mxu0 %v2414_v0 }
 0x2b9   :  { %v1419_v33 = vpop.f32.mrb[2].mxu0  ;;  %v1454_v34 = vpop.f32.mrb[2].mxu1 }
 0x2ba   :  { %v1420_v35 = vpop.f32.mrb[3].mxu0  ;;  %v1455_v36 = vpop.f32.mrb[3].mxu1 }
 0x2bb   :  { %v1421_v37 = vadd.f32 %v1420_v35, %v1419_v33  ;;  %v1456_v38 = vadd.f32 %v1455_v36, %v1454_v34  ;;  %v1000_v33 = vld [vmem:[#allocation2 + $0x758] sm:$0xff]  ;;  %v1001_v34 = vld [vmem:[#allocation2 + $0x760] sm:$0xff]  ;;  %v1002_v36 = vld [vmem:[#allocation2 + $0x768] sm:$0xff] }
 0x2bc   :  { %v2295_v35 = vpack.c.bf16 %v1001_v34, %v1000_v33  ;;  %v1094_v33 = vld [vmem:[#allocation2 + $0x878] sm:$0xff] }
 0x2bd   :  { %v491_v39 = vadd.f32 %v1456_v38, %v1421_v37  ;;  %v1003_v37 = vld [vmem:[#allocation2 + $0x770] sm:$0xff]  ;;  %v2346_v34 = vpack.c.bf16 %v1094_v33, %v1093_v32 }
 0x2be   :  { %2296 = vmatpush3.bf16.msra.mxu0 %v2295_v35  ;;  %v2298_v38 = vpack.c.bf16 %v1003_v37, %v1002_v36  ;;  %v1095_v35 = vld [vmem:[#allocation2 + $0x880] sm:$0xff]  ;;  %v1096_v36 = vld [vmem:[#allocation2 + $0x888] sm:$0xff] }
 0x2bf   :  { %2297 = vmatprep.subr.bf16.mxu0 %v2414_v0  ;;  %v2349_v37 = vpack.c.bf16 %v1096_v36, %v1095_v35 }
 0x2c2   :  { %2299 = vmatpush3.bf16.msra.mxu0 %v2298_v38  ;;  %v1097_v38 = vld [vmem:[#allocation2 + $0x890] sm:$0xff] }
 0x2c3   :  { %2300 = vmatprep.subr.bf16.mxu0 %v2414_v0 }
 0x2d9   :  { %v1489_v40 = vpop.f32.mrb[4].mxu0  ;;  %v1524_v41 = vpop.f32.mrb[4].mxu1 }
 0x2da   :  { %v1490_v42 = vpop.f32.mrb[5].mxu0  ;;  %v1525_v43 = vpop.f32.mrb[5].mxu1 }
 0x2db   :  { %v1491_v45 = vadd.f32 %v1490_v42, %v1489_v40  ;;  %v1526_v46 = vadd.f32 %v1525_v43, %v1524_v41  ;;  %v1005_v40 = vld [vmem:[#allocation2 + $0x780] sm:$0xff]  ;;  %v1006_v42 = vld [vmem:[#allocation2 + $0x788] sm:$0xff]  ;;  %v1007_v43 = vld [vmem:[#allocation2 + $0x790] sm:$0xff] }
 0x2dd   :  { %v561_v47 = vadd.f32 %v1491_v45, %v491_v39  ;;  %v1004_v39 = vld [vmem:[#allocation2 + $0x778] sm:$0xff]  ;;  %v2304_v45 = vpack.c.bf16 %v1007_v43, %v1006_v42  ;;  %v1100_v42 = vld [vmem:[#allocation2 + $0x8a8] sm:$0xff] }
 0x2de   :  { %v2301_v41 = vpack.c.bf16 %v1005_v40, %v1004_v39  ;;  %v1098_v39 = vld [vmem:[#allocation2 + $0x898] sm:$0xff] }
 0x2df   :  { %v631_v48 = vadd.f32 %v1526_v46, %v561_v47  ;;  %v747_v46 = vld [vmem:[#allocation2 + $0x618] sm:$0xff]  ;;  %v2352_v40 = vpack.c.bf16 %v1098_v39, %v1097_v38 }
 0x2e0   :  { %2302 = vmatpush3.bf16.msra.mxu0 %v2301_v41  ;;  %v1099_v41 = vld [vmem:[#allocation2 + $0x8a0] sm:$0xff] }
 0x2e1   :  { %v634_v49 = vrot.slane %v631_v48, 4  ;;  %2303 = vmatprep.subr.bf16.mxu0 %v2414_v0  ;;  %v2355_v43 = vpack.c.bf16 %v1100_v42, %v1099_v41 }
 0x2e3   :  { %v635_v50 = vadd.f32 %v634_v49, %v631_v48 }
 0x2e4   :  { %2305 = vmatpush3.bf16.msra.mxu0 %v2304_v45  ;;  %v1115_v45 = vld [vmem:[#allocation2 + $0x820] sm:$0xff] }
 0x2e5   :  { %v636_v51 = vrot.slane %v635_v50, 2  ;;  %2306 = vmatprep.subr.bf16.mxu0 %v2414_v0 }
 0x2e7   :  { %v637_v52 = vadd.f32 %v636_v51, %v635_v50 }
 0x2e9   :  { %v638_v53 = vrot.slane %v637_v52, 1 }
 0x2eb   :  { %v639_v54 = vadd.f32 %v638_v53, %v637_v52  ;;  %v1008_v52 = vld [vmem:[#allocation2 + $0x798] sm:$0xff]  ;;  %v1009_v53 = vld [vmem:[#allocation2 + $0x7a0] sm:$0xff] }
 0x2f9   :  { %v723_v55 = vpop.f32.mrb[6].mxu0 }
 0x2fa   :  { %v727_v57 = vadd.f32 %v723_v55, %v639_v54  ;;  %v1767_v58 = vpop.f32.mrb[7].mxu0  ;;  %v2307_v54 = vpack.c.bf16 %v1009_v53, %v1008_v52  ;;  %v1101_v55 = vld [vmem:[#allocation2 + $0x7b0] sm:$0xff]  ;;  %v1260_v52 = vld [vmem:[#allocation2 + $0x8b8] sm:$0xff]  ;;  %v1261_v53 = vld [vmem:[#allocation2 + $0x8c0] sm:$0xff] }
 0x2fc   :  { %v729_v61 = vadd.f32 %v728_v56, %v727_v57  ;;  %2308 = vmatpush3.bf16.msra.mxu0 %v2307_v54  ;;  %v1102_v56 = vld [vmem:[#allocation2 + $0x7b8] sm:$0xff]  ;;  %v1103_v57 = vld [vmem:[#allocation2 + $0x7c0] sm:$0xff] }
 0x2fd   :  { %2333 = vmatprep.subr.bf16.mxu0 %v2414_v0  ;;  %v2310_v58 = vpack.c.bf16 %v1102_v56, %v1101_v55  ;;  %v2313_v60 = vpack.c.bf16 %v1104_v59, %v1103_v57  ;;  %v2358_v57 = vpack.c.bf16 %v1261_v53, %v1260_v52  ;;  %v1262_v59 = vld [vmem:[#allocation2 + $0x8c8] sm:$0xff] }
 0x2fe   :  { %v730_v63 = vmax.f32 %v729_v61, 0.0  ;;  %v1105_v61 = vld [vmem:[#allocation2 + $0x7d0] sm:$0xff] }
 0x300   :  { %1801 = vmatmul.mubr.f32.vlgmr.msra.gmra.mrb[6].mxu1 %v730_v63 }
 0x301   :  { %2263 = vmatpush3.bf16.msra.mxu1 %v2262_v62  ;;  %1870 = vmatprep.mubr.msk.f32.mxu1 %vm2415_vm0, %v2416_v1  ;;  %v1106_v62 = vld [vmem:[#allocation2 + $0x7d8] sm:$0xff] }
 0x302   :  { %2264 = vmatprep.subr.bf16.mxu1 %v2414_v0  ;;  %v2316_v63 = vpack.c.bf16 %v1106_v62, %v1105_v61  ;;  %v1264_v61 = vld [vmem:[#allocation2 + $0x8d8] sm:$0xff]  ;;  %v1265_v62 = vld [vmem:[#allocation2 + $0x8e0] sm:$0xff] }
 0x305   :  { %2266 = vmatpush3.bf16.msra.mxu1 %v2265_v4  ;;  %v2319_v4 = vpack.c.bf16 %v1108_v3, %v1107_v2  ;;  %v1266_v2 = vld [vmem:[#allocation2 + $0x8e8] sm:$0xff]  ;;  %v1267_v3 = vld [vmem:[#allocation2 + $0x8f0] sm:$0xff] }
 0x306   :  { %2267 = vmatprep.subr.bf16.mxu1 %v2414_v0 }
 0x309   :  { %2269 = vmatpush3.bf16.msra.mxu1 %v2268_v7  ;;  %v2322_v7 = vpack.c.bf16 %v1110_v6, %v1109_v5  ;;  %v1268_v5 = vld [vmem:[#allocation2 + $0x8f8] sm:$0xff]  ;;  %v1269_v6 = vld [vmem:[#allocation2 + $0x900] sm:$0xff] }
 0x30a   :  { %2270 = vmatprep.subr.bf16.mxu1 %v2414_v0 }
 0x30d   :  { %2272 = vmatpush3.bf16.msra.mxu1 %v2271_v10  ;;  %v2325_v10 = vpack.c.bf16 %v1112_v9, %v1111_v8  ;;  %v1271_v8 = vld [vmem:[#allocation2 + $0x910] sm:$0xff] }
 0x30e   :  { %2273 = vmatprep.subr.bf16.mxu1 %v2414_v0 }
 0x311   :  { %2275 = vmatpush3.bf16.msra.mxu1 %v2274_v13  ;;  %v2328_v13 = vpack.c.bf16 %v1114_v12, %v1113_v11  ;;  %v1272_v12 = vld [vmem:[#allocation2 + $0x918] sm:$0xff] }
 0x312   :  { %2276 = vmatprep.subr.bf16.mxu1 %v2414_v0 }
 0x315   :  { %2278 = vmatpush3.bf16.msra.mxu1 %v2277_v16 }
 0x316   :  { %2279 = vmatprep.subr.bf16.mxu1 %v2414_v0 }
 0x319   :  { %2281 = vmatpush3.bf16.msra.mxu1 %v2280_v19  ;;  %v917_v50 = vpop.f32.mrb[8].mxu0  ;;  %v1086_v19 = vld [vmem:[#allocation2 + $0x838] sm:$0xff] }
 0x31a   :  { %2282 = vmatprep.subr.bf16.mxu1 %v2414_v0  ;;  %v1837_v51 = vpop.f32.mrb[9].mxu0  ;;  %v2334_v21 = vpack.c.bf16 %v1086_v19, %v1085_v18  ;;  %v1257_v19 = vld [vmem:[#allocation2 + $0x8b0] sm:$0xff] }
 0x31d   :  { %2284 = vmatpush3.bf16.msra.mxu1 %v2283_v22 }
 0x31e   :  { %2309 = vmatprep.subr.bf16.mxu1 %v2414_v0 }
 0x3d3   :  { %v814_v47 = vpop.f32.mrb[6].mxu1 }
 0x3d4   :  { %v815_v48 = vadd.f32 %v814_v47, %v747_v46  ;;  %v1802_v49 = vpop.f32.mrb[7].mxu1  ;;  %v1116_v46 = vld [vmem:[#allocation2 + $0x828] sm:$0xff] }
 0x3d5   :  { %v2331_v47 = vpack.c.bf16 %v1116_v46, %v1115_v45 }
 0x3d6   :  { %1871 = vmatmul.mubr.f32.vlgmr.msra.gmra.mrb[8].mxu1 %v815_v48  ;;  %v1081_v48 = vlaneseq }
 0x3d7   :  { %1940 = vmatprep.mubr.msk.f32.mxu1 %vm2415_vm0, %v2416_v1  ;;  %2311 = vmatpush3.bf16.msra.mxu1 %v2310_v58 }
 0x3d8   :  { %2312 = vmatprep.subr.bf16.mxu1 %v2414_v0  ;;  %v1082_v49 = vshrl.u32 %v1081_v48, 7 }
 0x3da   :  { %v1083_v51 = vsub.s32 0, %v1082_v49 }
 0x3db   :  { %2314 = vmatpush3.bf16.msra.mxu1 %v2313_v60  ;;  %v1263_v60 = vld [vmem:[#allocation2 + $0x8d0] sm:$0xff] }
 0x3dc   :  { %2315 = vmatprep.subr.bf16.mxu1 %v2414_v0 }
 0x3df   :  { %2317 = vmatpush3.bf16.msra.mxu1 %v2316_v63  ;;  %v2364_v63 = vpack.c.bf16 %v1265_v62, %v1264_v61 }
 0x3e0   :  { %2318 = vmatprep.subr.bf16.mxu1 %v2414_v0 }
 0x3e3   :  { %2320 = vmatpush3.bf16.msra.mxu1 %v2319_v4  ;;  %v2367_v4 = vpack.c.bf16 %v1267_v3, %v1266_v2 }
 0x3e4   :  { %2321 = vmatprep.subr.bf16.mxu1 %v2414_v0 }
 0x3e7   :  { %2323 = vmatpush3.bf16.msra.mxu1 %v2322_v7  ;;  %v2370_v7 = vpack.c.bf16 %v1269_v6, %v1268_v5 }
 0x3e8   :  { %2324 = vmatprep.subr.bf16.mxu1 %v2414_v0 }
 0x3eb   :  { %2326 = vmatpush3.bf16.msra.mxu1 %v2325_v10 }
 0x3ec   :  { %2327 = vmatprep.subr.bf16.mxu1 %v2414_v0 }
 0x3ef   :  { %2329 = vmatpush3.bf16.msra.mxu1 %v2328_v13  ;;  %v1273_v13 = vld [vmem:[#allocation2 + $0x920] sm:$0xff] }
 0x3f0   :  { %2330 = vmatprep.subr.bf16.mxu1 %v2414_v0 }
 0x3f3   :  { %2332 = vmatpush3.bf16.msra.mxu1 %v2331_v47 }
 0x3f4   :  { %2357 = vmatprep.subr.bf16.mxu1 %v2414_v0 }
 0x4a9   :  { %v987_v14 = vpop.f32.mrb[8].mxu1 }
 0x4aa   :  { %v988_v16 = vadd.f32 %v987_v14, %v917_v50  ;;  %v1872_v17 = vpop.f32.mrb[9].mxu1  ;;  %v1010_v50 = vld [vmem:[#allocation2 + $0x7a8] sm:$0xff]  ;;  %v2376_v14 = vpack.c.bf16 %v1273_v13, %v1272_v12 }
 0x4ac   :  { %v992_v20 = vadd.f32 %v991_v15, %v988_v16  ;;  %v1274_v15 = vld [vmem:[#allocation2 + $0x928] sm:$0xff]  ;;  %v1275_v16 = vld [vmem:[#allocation2 + $0x930] sm:$0xff] }
 0x4ad   :  { %v2379_v17 = vpack.c.bf16 %v1275_v16, %v1274_v15 }
 0x4ae   :  { %v993_v22 = vmax.f32 %v992_v20, 0.0 }
 0x4b0   :  { %1906 = vmatmul.mubr.f32.vlgmr.msra.gmra.mrb[10].mxu0 %v993_v22 }
 0x4b1   :  { %2335 = vmatpush3.bf16.msra.mxu0 %v2334_v21  ;;  %1975 = vmatprep.mubr.msk.f32.mxu0 %vm2415_vm0, %v2416_v1 }
 0x4b2   :  { %2336 = vmatprep.subr.bf16.mxu0 %v2414_v0 }
 0x4b5   :  { %2338 = vmatpush3.bf16.msra.mxu0 %v2337_v25 }
 0x4b6   :  { %2339 = vmatprep.subr.bf16.mxu0 %v2414_v0 }
 0x4b9   :  { %2341 = vmatpush3.bf16.msra.mxu0 %v2340_v28 }
 0x4ba   :  { %2342 = vmatprep.subr.bf16.mxu0 %v2414_v0 }
 0x4bd   :  { %2344 = vmatpush3.bf16.msra.mxu0 %v2343_v31 }
 0x4be   :  { %2345 = vmatprep.subr.bf16.mxu0 %v2414_v0 }
 0x4c1   :  { %2347 = vmatpush3.bf16.msra.mxu0 %v2346_v34 }
 0x4c2   :  { %2348 = vmatprep.subr.bf16.mxu0 %v2414_v0 }
 0x4c5   :  { %2350 = vmatpush3.bf16.msra.mxu0 %v2349_v37 }
 0x4c6   :  { %2351 = vmatprep.subr.bf16.mxu0 %v2414_v0 }
 0x4c9   :  { %2353 = vmatpush3.bf16.msra.mxu0 %v2352_v40 }
 0x4ca   :  { %2354 = vmatprep.subr.bf16.mxu0 %v2414_v0 }
 0x4cd   :  { %2356 = vmatpush3.bf16.msra.mxu0 %v2355_v43 }
 0x4d0   :  { %1976 = vmatmul.mubr.f32.vlgmr.msra.gmra.mrb[12].mxu0 %v2494_v44  ;;  %v2361_v44 = vpack.c.bf16 %v1263_v60, %v1262_v59 }
 0x583   :  { %v1077_v54 = vpop.f32.mrb[10].mxu0 }
 0x584   :  { %v1078_v55 = vadd.f32 %v1077_v54, %v1010_v50  ;;  %v1907_v56 = vpop.f32.mrb[11].mxu0 }
 0x586   :  { %v1084_v58 = vrot.slane %v1078_v55, %v1083_v51 }
 0x588   :  { %1941 = vmatmul.mubr.f32.vlgmr.msra.gmra.mrb[10].mxu1 %v1084_v58 }
 0x589   :  { %2359 = vmatpush3.bf16.msra.mxu1 %v2358_v57  ;;  %2010 = vmatprep.mubr.msk.f32.mxu1 %vm2415_vm0, %v2416_v1  ;;  %v1270_v1 = vld [vmem:[#allocation2 + $0x908] sm:$0xff] }
 0x58a   :  { %2360 = vmatprep.subr.bf16.mxu1 %v2414_v0  ;;  %v2373_v9 = vpack.c.bf16 %v1271_v8, %v1270_v1 }
 0x58d   :  { %2362 = vmatpush3.bf16.msra.mxu1 %v2361_v44 }
 0x58e   :  { %2363 = vmatprep.subr.bf16.mxu1 %v2414_v0 }
 0x591   :  { %2365 = vmatpush3.bf16.msra.mxu1 %v2364_v63 }
 0x592   :  { %2366 = vmatprep.subr.bf16.mxu1 %v2414_v0 }
 0x595   :  { %2368 = vmatpush3.bf16.msra.mxu1 %v2367_v4 }
 0x596   :  { %2369 = vmatprep.subr.bf16.mxu1 %v2414_v0 }
 0x599   :  { %2371 = vmatpush3.bf16.msra.mxu1 %v2370_v7 }
 0x59a   :  { %2372 = vmatprep.subr.bf16.mxu1 %v2414_v0 }
 0x59d   :  { %2374 = vmatpush3.bf16.msra.mxu1 %v2373_v9 }
 0x59e   :  { %2375 = vmatprep.subr.bf16.mxu1 %v2414_v0 }
 0x5a1   :  { %2377 = vmatpush3.bf16.msra.mxu1 %v2376_v14 }
 0x5a2   :  { %2378 = vmatprep.subr.bf16.mxu1 %v2414_v0 }
 0x5a3   :  { %v1253_v10 = vpop.f32.mrb[12].mxu0 }
 0x5a4   :  { %v1977_v11 = vpop.f32.mrb[13].mxu0 }
 0x5a5   :  { %2380 = vmatpush3.bf16.msra.mxu1 %v2379_v17 }
 0x65b   :  { %v1183_v18 = vpop.f32.mrb[10].mxu1 }
 0x65c   :  { %v1254_v20 = vadd.f32 %v1253_v10, %v1183_v18  ;;  %v1942_v21 = vpop.f32.mrb[11].mxu1 }
 0x65e   :  { %v1258_v22 = vadd.f32 %v1257_v19, %v1254_v20 }
 0x660   :  { %v1259_v23 = vmax.f32 %v1258_v22, 0.0 }
 0x662   :  { %2011 = vmatmul.mubr.f32.vlgmr.msra.gmra.mrb[12].mxu1 %v1259_v23 }
 0x735   :  { %v1343_v25 = vpop.f32.mrb[12].mxu1 }
 0x736   :  { %v1344_v26 = vadd.f32 %v1343_v25, %v1276_v24  ;;  %v2012_v27 = vpop.f32.mrb[13].mxu1 }
 0x738   :  { %1347 = vst [vmem:[%s2611_s5] sm:$0xff] %v1344_v26 }
 0x739   :  { %1352 = vsyncpa [#allocation3], 1 }

</bundles_post_ra>
